<compile_context>
chip_gen: v7x
topology: tpu7x:2x2x1
jax: 0.10.0
libtpu: 0.0.40
codegen_flags: <defaults>
</compile_context>

<pallas_src>
import functools

import jax
import jax.numpy as jnp
from jax import lax
from jax.experimental import pallas as pl
from jax.experimental.pallas import tpu as pltpu

FEAT = 512              # ResNet18 feature width after global avg pool (fc = Identity)
NB_CLASSES = 3          # MyEnsemble(nb_classes=3)
NF = 3 * FEAT           # fused feature width of the three backbones (1536)
LANE = 128              # TPU lane width
FC = 64                 # feature (sublane) chunk per inner step (bounds vreg pressure)
NPAD = 128              # classifier output padded to one full lane width
KPAD = 8                # channel contraction dim padded to one sublane tile (3 -> 8, zeros)
TS_MAX = 4096           # spatial lanes per grid step
FSPLIT = 2              # feature-dim parallel split -> both v7x TCs busy even at B == 1


def _round_up(x, m):
    return ((x + m - 1) // m) * m


def _ensemble_kernel(x_ref, wt_ref, wc_ref, o_ref, xs_ref, acc_ref, *,
                     n_chan, s_total, inv_spatial):
    # x_ref  : (1, C, TS)       spatial tile: S lane-dense, channels on sublanes
    # wt_ref : (NFg, KPAD)      backbone weight slice for this feature split (K zero-padded)
    # wc_ref : (NFg, NPAD)      classifier weight slice (3 output classes zero-padded to 128)
    # o_ref  : (1, 1, 8, NPAD)  partial head output for this (split, batch) pair
    # xs_ref : (KPAD, TS)       staged + lane-masked x tile (rows n_chan..KPAD stay zero)
    # acc_ref: (NFg, LANE) f32  per-lane partial sums of relu(w @ x), resident across s axis
    s_idx = pl.program_id(2)
    nfg = wt_ref.shape[0]
    ts = xs_ref.shape[1]
    n_strips = ts // LANE
    n_chunks = nfg // FC

    @pl.when(s_idx == 0)
    def _init():
        acc_ref[...] = jnp.zeros_like(acc_ref)
        xs_ref[...] = jnp.zeros_like(xs_ref)   # clears K-pad rows (never written below)

    # Stage the x tile into VMEM scratch, zeroing lanes past the true spatial extent.
    # (Handles the ragged last tile in-kernel; no host-side jnp.pad of x.)
    base = s_idx * ts
    lane_pos = lax.broadcasted_iota(jnp.int32, (1, LANE), 1)
    for l in range(n_strips):
        valid = (lane_pos + (base + l * LANE)) < s_total
        xs = x_ref[0, :, l * LANE:(l + 1) * LANE]                     # (C, LANE)
        xs_ref[0:n_chan, l * LANE:(l + 1) * LANE] = jnp.where(valid, xs, 0.0)

    # Main contraction on the MXU: per feature chunk, per 128-lane strip,
    # (FC, KPAD) @ (KPAD, LANE) -> (FC, LANE); only ReLU + accumulate stay on the VPU.
    @pl.loop(0, n_chunks)
    def _chunk(j):
        jo = pl.multiple_of(j * FC, FC)
        wc_j = wt_ref[pl.ds(jo, FC), :]                               # (FC, KPAD)
        part = jnp.zeros((FC, LANE), jnp.float32)
        for l in range(n_strips):
            xs = xs_ref[:, l * LANE:(l + 1) * LANE]                   # (KPAD, LANE) = 1 vreg
            h = jnp.dot(wc_j, xs, preferred_element_type=jnp.float32)
            part = part + jnp.maximum(h, 0.0)                         # ReLU + per-lane sum
        acc_ref[pl.ds(jo, FC), :] += part                             # one VMEM RMW per chunk

    @pl.when(s_idx == pl.num_programs(2) - 1)
    def _finalize():
        # Global average pool + (partial) classifier head while features are still in VMEM.
        y = jnp.zeros((1, NPAD), jnp.float32)
        for j in range(n_chunks):
            acc_c = acc_ref[j * FC:(j + 1) * FC, :]                       # (FC, LANE)
            feat = jnp.sum(acc_c, axis=1, keepdims=True) * inv_spatial    # (FC, 1)
            feat = jnp.maximum(feat, 0.0)                                 # head ReLU
            y = y + jnp.sum(feat * wc_ref[j * FC:(j + 1) * FC, :],
                            axis=0, keepdims=True)                        # (1, NPAD)
        o_ref[...] = jnp.broadcast_to(y.reshape(1, 1, 1, NPAD), (1, 1, 8, NPAD))


def my_ensemble_forward(params, x_nchw):
    B, C, H, W = x_nchw.shape
    S = H * W
    x_bcs = x_nchw.reshape(B, C, S)          # pure reshape of NCHW; no transpose, no pad

    TS = min(TS_MAX, _round_up(S, LANE))     # lane-dense spatial tile (multiple of 128)
    n_s_tiles = pl.cdiv(S, TS)               # ragged last tile is masked in-kernel
    NFg = NF // FSPLIT
    assert NF % FSPLIT == 0 and NFg % FC == 0

    # Fused backbone weight (features on sublanes), contraction dim zero-padded 3 -> 8.
    wt = jnp.concatenate([params["wA"], params["wB"], params["wC"]], axis=1).T   # (NF, C)
    wt_pad = jnp.zeros((NF, KPAD), jnp.float32).at[:, :C].set(wt)
    # Classifier weight zero-padded to a full 128-lane output slab; bias added in wrapper.
    wc_pad = jnp.zeros((NF, NPAD), jnp.float32).at[:, :NB_CLASSES].set(params["w_cls"])
    b_pad = jnp.zeros((1, NPAD), jnp.float32).at[0, :NB_CLASSES].set(params["b_cls"])

    kern = functools.partial(_ensemble_kernel, n_chan=C, s_total=S, inv_spatial=1.0 / S)
    out = pl.pallas_call(
        kern,
        out_shape=jax.ShapeDtypeStruct((FSPLIT, B, 8, NPAD), jnp.float32),
        grid_spec=pltpu.PrefetchScalarGridSpec(
            num_scalar_prefetch=0,
            grid=(FSPLIT, B, n_s_tiles),
            in_specs=[
                pl.BlockSpec((1, C, TS), lambda g, b, s: (b, 0, s)),
                pl.BlockSpec((NFg, KPAD), lambda g, b, s: (g, 0)),
                pl.BlockSpec((NFg, NPAD), lambda g, b, s: (g, 0)),
            ],
            out_specs=pl.BlockSpec((1, 1, 8, NPAD), lambda g, b, s: (g, b, 0, 0)),
            scratch_shapes=[
                pltpu.VMEM((KPAD, TS), jnp.float32),     # staged, masked x tile
                pltpu.VMEM((NFg, LANE), jnp.float32),    # per-lane feature accumulator
            ],
        ),
        compiler_params=pltpu.CompilerParams(
            dimension_semantics=("parallel", "parallel", "arbitrary"),
            vmem_limit_bytes=32 * 1024 * 1024,
        ),
    )(x_bcs, wt_pad, wc_pad)

    # Combine the two feature-split partial head vectors, add bias, strip lane padding.
    y = out[:, :, 0, :].sum(axis=0) + b_pad          # (B, NPAD)
    return y[:, :NB_CLASSES]


def init_params(key, in_channels=3):
    kA, kB, kC, kW, kb = jax.random.split(key, 5)
    scale_cls = 1.0 / jnp.sqrt(3 * FEAT)
    return {
        "wA": 0.1 * jax.random.normal(kA, (in_channels, FEAT), jnp.float32),
        "wB": 0.1 * jax.random.normal(kB, (in_channels, FEAT), jnp.float32),
        "wC": 0.1 * jax.random.normal(kC, (in_channels, FEAT), jnp.float32),
        "w_cls": scale_cls * jax.random.normal(kW, (3 * FEAT, NB_CLASSES), jnp.float32),
        "b_cls": scale_cls * jax.random.normal(kb, (NB_CLASSES,), jnp.float32),
    }


def reference_forward(params, x_nchw):
    B, C, H, W = x_nchw.shape
    x_bcs = x_nchw.reshape(B, C, H * W)

    def feat(w):
        h = jnp.maximum(jnp.einsum("bcs,cf->bsf", x_bcs, w), 0.0)
        return jnp.mean(h, axis=1)

    f = jnp.concatenate([feat(params["wA"]), feat(params["wB"]), feat(params["wC"])],
                        axis=1)
    return jnp.maximum(f, 0.0) @ params["w_cls"] + params["b_cls"]


if __name__ == "__main__":
    key = jax.random.PRNGKey(0)
    k_param, k_x = jax.random.split(key)
    params = init_params(k_param)
    x = jax.random.normal(k_x, (2, 3, 16, 16), jnp.float32)   # NCHW, like PyTorch

    out = jax.jit(my_ensemble_forward)(params, x)
    out = jax.block_until_ready(out)

    ref = reference_forward(params, x)
    assert out.shape == (2, NB_CLASSES), out.shape
    assert jnp.allclose(out, ref, atol=2e-3, rtol=2e-3), (out, ref)
    print("KERNEL_OK")
</pallas_src>

<mosaic_0001>
module attributes {stable_mosaic.version = 11 : i64} {
  func.func @_ensemble_kernel(%arg0: i32, %arg1: i32, %arg2: i32, %arg3: memref<1x3x256xf32, #tpu.memory_space<vmem>>, %arg4: memref<768x8xf32, #tpu.memory_space<vmem>>, %arg5: memref<768x128xf32, #tpu.memory_space<vmem>>, %arg6: memref<1x1x8x128xf32, #tpu.memory_space<vmem>>, %arg7: memref<8x256xf32, #tpu.memory_space<vmem>>, %arg8: memref<768x128xf32, #tpu.memory_space<vmem>>) attributes {dimension_semantics = [#tpu.dimension_semantics<parallel>, #tpu.dimension_semantics<parallel>, #tpu.dimension_semantics<arbitrary>], iteration_bounds = array<i64: 2, 2, 1>, scalar_prefetch = 0 : i64, scratch_operands = 2 : i64, tpu.core_type = #tpu.core_type<tc>, window_params = [{transform_indices = @transform_0, window_bounds = array<i64: 1, 3, 256>}, {transform_indices = @transform_1, window_bounds = array<i64: 768, 8>}, {transform_indices = @transform_2, window_bounds = array<i64: 768, 128>}, {transform_indices = @transform_3, window_bounds = array<i64: 1, 1, 8, 128>}]} {
    %c0_i32 = arith.constant 0 : i32
    %0 = arith.cmpi eq, %arg2, %c0_i32 : i32
    %1 = arith.extui %0 : i1 to i32
    %c0_i32_0 = arith.constant 0 : i32
    %2 = arith.cmpi ne, %1, %c0_i32_0 : i32
    scf.if %2 {
      %cst_17 = arith.constant 0.000000e+00 : f32
      %33 = vector.broadcast %cst_17 : f32 to vector<768x128xf32>
      %c0_18 = arith.constant 0 : index
      %c0_19 = arith.constant 0 : index
      %34 = vector.load %arg8[%c0_18, %c0_19] : memref<768x128xf32, #tpu.memory_space<vmem>>, vector<768x128xf32>
      tpu.vector_store %arg8[%c0_18, %c0_19], %33 {strides = array<i32>} : memref<768x128xf32, #tpu.memory_space<vmem>>, vector<768x128xf32>,
      %cst_20 = arith.constant 0.000000e+00 : f32
      %35 = vector.broadcast %cst_20 : f32 to vector<8x256xf32>
      %c0_21 = arith.constant 0 : index
      %c0_22 = arith.constant 0 : index
      %36 = vector.load %arg7[%c0_21, %c0_22] : memref<8x256xf32, #tpu.memory_space<vmem>>, vector<8x256xf32>
      tpu.vector_store %arg7[%c0_21, %c0_22], %35 {strides = array<i32>} : memref<8x256xf32, #tpu.memory_space<vmem>>, vector<8x256xf32>,
    } else {
    }
    %c256_i32 = arith.constant 256 : i32
    %3 = arith.muli %arg2, %c256_i32 : i32
    %4 = tpu.iota {dimensions = array<i32: 1>} : vector<1x128xi32>
    %c0_i32_1 = arith.constant 0 : i32
    %5 = arith.addi %3, %c0_i32_1 : i32
    %6 = vector.broadcast %5 : i32 to vector<1x128xi32>
    %7 = arith.addi %4, %6 : vector<1x128xi32>
    %c256_i32_2 = arith.constant 256 : i32
    %8 = vector.broadcast %c256_i32_2 : i32 to vector<1x128xi32>
    %9 = arith.cmpi slt, %7, %8 : vector<1x128xi32>
    %c0 = arith.constant 0 : index
    %c0_3 = arith.constant 0 : index
    %c0_4 = arith.constant 0 : index
    %10 = vector.load %arg3[%c0, %c0_3, %c0_4] : memref<1x3x256xf32, #tpu.memory_space<vmem>>, vector<1x3x128xf32>
    %11 = vector.shape_cast %10 : vector<1x3x128xf32> to vector<3x128xf32>
    %cst = arith.constant 0.000000e+00 : f32
    %12 = vector.shape_cast %9 : vector<1x128xi1> to vector<1x128xi1>
    %13 = vector.broadcast %12 : vector<1x128xi1> to vector<3x128xi1>
    %14 = vector.broadcast %cst : f32 to vector<3x128xf32>
    %15 = arith.select %13, %11, %14 : vector<3x128xi1>, vector<3x128xf32>
    %c0_5 = arith.constant 0 : index
    %c0_6 = arith.constant 0 : index
    %16 = vector.load %arg7[%c0_5, %c0_6] : memref<8x256xf32, #tpu.memory_space<vmem>>, vector<3x128xf32>
    tpu.vector_store %arg7[%c0_5, %c0_6], %15 {strides = array<i32>} : memref<8x256xf32, #tpu.memory_space<vmem>>, vector<3x128xf32>,
    %c128_i32 = arith.constant 128 : i32
    %17 = arith.addi %3, %c128_i32 : i32
    %18 = vector.broadcast %17 : i32 to vector<1x128xi32>
    %19 = arith.addi %4, %18 : vector<1x128xi32>
    %c256_i32_7 = arith.constant 256 : i32
    %20 = vector.broadcast %c256_i32_7 : i32 to vector<1x128xi32>
    %21 = arith.cmpi slt, %19, %20 : vector<1x128xi32>
    %c0_8 = arith.constant 0 : index
    %c0_9 = arith.constant 0 : index
    %c128 = arith.constant 128 : index
    %22 = vector.load %arg3[%c0_8, %c0_9, %c128] : memref<1x3x256xf32, #tpu.memory_space<vmem>>, vector<1x3x128xf32>
    %23 = vector.shape_cast %22 : vector<1x3x128xf32> to vector<3x128xf32>
    %cst_10 = arith.constant 0.000000e+00 : f32
    %24 = vector.shape_cast %21 : vector<1x128xi1> to vector<1x128xi1>
    %25 = vector.broadcast %24 : vector<1x128xi1> to vector<3x128xi1>
    %26 = vector.broadcast %cst_10 : f32 to vector<3x128xf32>
    %27 = arith.select %25, %23, %26 : vector<3x128xi1>, vector<3x128xf32>
    %c0_11 = arith.constant 0 : index
    %c128_12 = arith.constant 128 : index
    %28 = vector.load %arg7[%c0_11, %c128_12] : memref<8x256xf32, #tpu.memory_space<vmem>>, vector<3x128xf32>
    tpu.vector_store %arg7[%c0_11, %c128_12], %27 {strides = array<i32>} : memref<8x256xf32, #tpu.memory_space<vmem>>, vector<3x128xf32>,
    %c0_i32_13 = arith.constant 0 : i32
    %c12_i32 = arith.constant 12 : i32
    %29 = arith.addi %c0_i32_13, %c12_i32 : i32
    %c1_i32 = arith.constant 1 : i32
    scf.for %arg9 = %c0_i32_13 to %29 step %c1_i32  : i32 {
      %c1_i32_17 = arith.constant 1 : i32
      %33 = arith.muli %arg9, %c1_i32_17 : i32
      %c0_i32_18 = arith.constant 0 : i32
      %34 = arith.addi %c0_i32_18, %33 : i32
      %c64_i32 = arith.constant 64 : i32
      %35 = arith.muli %34, %c64_i32 : i32
      %36 = tpu.assume_multiple %35, 64 : i32
      %37 = arith.index_cast %36 : i32 to index
      %c0_19 = arith.constant 0 : index
      %38 = vector.load %arg4[%37, %c0_19] : memref<768x8xf32, #tpu.memory_space<vmem>>, vector<64x8xf32>
      %cst_20 = arith.constant 0.000000e+00 : f32
      %39 = vector.broadcast %cst_20 : f32 to vector<64x128xf32>
      %c0_21 = arith.constant 0 : index
      %c0_22 = arith.constant 0 : index
      %40 = vector.load %arg7[%c0_21, %c0_22] : memref<8x256xf32, #tpu.memory_space<vmem>>, vector<8x128xf32>
      %cst_23 = arith.constant dense<0.000000e+00> : vector<64x128xf32>
      %41 = tpu.matmul %38, %40, %cst_23 {dimension_numbers = #tpu.dot_dimension_numbers<[1], [0], [0], [1], [0, 0, 1, 1], [], []>} : vector<64x8xf32>, vector<8x128xf32>, vector<64x128xf32> -> vector<64x128xf32>
      %cst_24 = arith.constant 0.000000e+00 : f32
      %42 = vector.broadcast %cst_24 : f32 to vector<64x128xf32>
      %43 = arith.maximumf %41, %42 : vector<64x128xf32>
      %44 = arith.addf %39, %43 : vector<64x128xf32>
      %c0_25 = arith.constant 0 : index
      %c128_26 = arith.constant 128 : index
      %45 = vector.load %arg7[%c0_25, %c128_26] : memref<8x256xf32, #tpu.memory_space<vmem>>, vector<8x128xf32>
      %cst_27 = arith.constant dense<0.000000e+00> : vector<64x128xf32>
      %46 = tpu.matmul %38, %45, %cst_27 {dimension_numbers = #tpu.dot_dimension_numbers<[1], [0], [0], [1], [0, 0, 1, 1], [], []>} : vector<64x8xf32>, vector<8x128xf32>, vector<64x128xf32> -> vector<64x128xf32>
      %cst_28 = arith.constant 0.000000e+00 : f32
      %47 = vector.broadcast %cst_28 : f32 to vector<64x128xf32>
      %48 = arith.maximumf %46, %47 : vector<64x128xf32>
      %49 = arith.addf %44, %48 : vector<64x128xf32>
      %50 = arith.index_cast %36 : i32 to index
      %c0_29 = arith.constant 0 : index
      %51 = vector.load %arg8[%50, %c0_29] : memref<768x128xf32, #tpu.memory_space<vmem>>, vector<64x128xf32>
      %52 = arith.addf %51, %49 : vector<64x128xf32>
      %53 = arith.index_cast %36 : i32 to index
      %c0_30 = arith.constant 0 : index
      %54 = vector.load %arg8[%53, %c0_30] : memref<768x128xf32, #tpu.memory_space<vmem>>, vector<64x128xf32>
      tpu.vector_store %arg8[%53, %c0_30], %52 {strides = array<i32>} : memref<768x128xf32, #tpu.memory_space<vmem>>, vector<64x128xf32>,
    }
    %c12_i32_14 = arith.constant 12 : i32
    %c0_i32_15 = arith.constant 0 : i32
    %30 = arith.cmpi eq, %arg2, %c0_i32_15 : i32
    %31 = arith.extui %30 : i1 to i32
    %c0_i32_16 = arith.constant 0 : i32
    %32 = arith.cmpi ne, %31, %c0_i32_16 : i32
    scf.if %32 {
      %cst_17 = arith.constant 0.000000e+00 : f32
      %33 = vector.broadcast %cst_17 : f32 to vector<1x128xf32>
      %c0_18 = arith.constant 0 : index
      %c0_19 = arith.constant 0 : index
      %34 = vector.load %arg8[%c0_18, %c0_19] : memref<768x128xf32, #tpu.memory_space<vmem>>, vector<64x128xf32>
      %cst_20 = arith.constant dense<0.000000e+00> : vector<64xf32>
      %35 = vector.multi_reduction <add>, %34, %cst_20 [1] : vector<64x128xf32> to vector<64xf32>
      %36 = vector.shape_cast %35 : vector<64xf32> to vector<64x1xf32>
      %cst_21 = arith.constant 3.906250e-03 : f32
      %37 = vector.broadcast %cst_21 : f32 to vector<64x1xf32>
      %38 = arith.mulf %36, %37 : vector<64x1xf32>
      %cst_22 = arith.constant 0.000000e+00 : f32
      %39 = vector.broadcast %cst_22 : f32 to vector<64x1xf32>
      %40 = arith.maximumf %38, %39 : vector<64x1xf32>
      %c0_23 = arith.constant 0 : index
      %c0_24 = arith.constant 0 : index
      %41 = vector.load %arg5[%c0_23, %c0_24] : memref<768x128xf32, #tpu.memory_space<vmem>>, vector<64x128xf32>
      %42 = vector.broadcast %40 : vector<64x1xf32> to vector<64x128xf32>
      %43 = arith.mulf %42, %41 : vector<64x128xf32>
      %cst_25 = arith.constant dense<0.000000e+00> : vector<128xf32>
      %44 = vector.multi_reduction <add>, %43, %cst_25 [0] : vector<64x128xf32> to vector<128xf32>
      %45 = vector.shape_cast %44 : vector<128xf32> to vector<1x128xf32>
      %46 = arith.addf %33, %45 : vector<1x128xf32>
      %c64 = arith.constant 64 : index
      %c0_26 = arith.constant 0 : index
      %47 = vector.load %arg8[%c64, %c0_26] : memref<768x128xf32, #tpu.memory_space<vmem>>, vector<64x128xf32>
      %cst_27 = arith.constant dense<0.000000e+00> : vector<64xf32>
      %48 = vector.multi_reduction <add>, %47, %cst_27 [1] : vector<64x128xf32> to vector<64xf32>
      %49 = vector.shape_cast %48 : vector<64xf32> to vector<64x1xf32>
      %cst_28 = arith.constant 3.906250e-03 : f32
      %50 = vector.broadcast %cst_28 : f32 to vector<64x1xf32>
      %51 = arith.mulf %49, %50 : vector<64x1xf32>
      %cst_29 = arith.constant 0.000000e+00 : f32
      %52 = vector.broadcast %cst_29 : f32 to vector<64x1xf32>
      %53 = arith.maximumf %51, %52 : vector<64x1xf32>
      %c64_30 = arith.constant 64 : index
      %c0_31 = arith.constant 0 : index
      %54 = vector.load %arg5[%c64_30, %c0_31] : memref<768x128xf32, #tpu.memory_space<vmem>>, vector<64x128xf32>
      %55 = vector.broadcast %53 : vector<64x1xf32> to vector<64x128xf32>
      %56 = arith.mulf %55, %54 : vector<64x128xf32>
      %cst_32 = arith.constant dense<0.000000e+00> : vector<128xf32>
      %57 = vector.multi_reduction <add>, %56, %cst_32 [0] : vector<64x128xf32> to vector<128xf32>
      %58 = vector.shape_cast %57 : vector<128xf32> to vector<1x128xf32>
      %59 = arith.addf %46, %58 : vector<1x128xf32>
      %c128_33 = arith.constant 128 : index
      %c0_34 = arith.constant 0 : index
      %60 = vector.load %arg8[%c128_33, %c0_34] : memref<768x128xf32, #tpu.memory_space<vmem>>, vector<64x128xf32>
      %cst_35 = arith.constant dense<0.000000e+00> : vector<64xf32>
      %61 = vector.multi_reduction <add>, %60, %cst_35 [1] : vector<64x128xf32> to vector<64xf32>
      %62 = vector.shape_cast %61 : vector<64xf32> to vector<64x1xf32>
      %cst_36 = arith.constant 3.906250e-03 : f32
      %63 = vector.broadcast %cst_36 : f32 to vector<64x1xf32>
      %64 = arith.mulf %62, %63 : vector<64x1xf32>
      %cst_37 = arith.constant 0.000000e+00 : f32
      %65 = vector.broadcast %cst_37 : f32 to vector<64x1xf32>
      %66 = arith.maximumf %64, %65 : vector<64x1xf32>
      %c128_38 = arith.constant 128 : index
      %c0_39 = arith.constant 0 : index
      %67 = vector.load %arg5[%c128_38, %c0_39] : memref<768x128xf32, #tpu.memory_space<vmem>>, vector<64x128xf32>
      %68 = vector.broadcast %66 : vector<64x1xf32> to vector<64x128xf32>
      %69 = arith.mulf %68, %67 : vector<64x128xf32>
      %cst_40 = arith.constant dense<0.000000e+00> : vector<128xf32>
      %70 = vector.multi_reduction <add>, %69, %cst_40 [0] : vector<64x128xf32> to vector<128xf32>
      %71 = vector.shape_cast %70 : vector<128xf32> to vector<1x128xf32>
      %72 = arith.addf %59, %71 : vector<1x128xf32>
      %c192 = arith.constant 192 : index
      %c0_41 = arith.constant 0 : index
      %73 = vector.load %arg8[%c192, %c0_41] : memref<768x128xf32, #tpu.memory_space<vmem>>, vector<64x128xf32>
      %cst_42 = arith.constant dense<0.000000e+00> : vector<64xf32>
      %74 = vector.multi_reduction <add>, %73, %cst_42 [1] : vector<64x128xf32> to vector<64xf32>
      %75 = vector.shape_cast %74 : vector<64xf32> to vector<64x1xf32>
      %cst_43 = arith.constant 3.906250e-03 : f32
      %76 = vector.broadcast %cst_43 : f32 to vector<64x1xf32>
      %77 = arith.mulf %75, %76 : vector<64x1xf32>
      %cst_44 = arith.constant 0.000000e+00 : f32
      %78 = vector.broadcast %cst_44 : f32 to vector<64x1xf32>
      %79 = arith.maximumf %77, %78 : vector<64x1xf32>
      %c192_45 = arith.constant 192 : index
      %c0_46 = arith.constant 0 : index
      %80 = vector.load %arg5[%c192_45, %c0_46] : memref<768x128xf32, #tpu.memory_space<vmem>>, vector<64x128xf32>
      %81 = vector.broadcast %79 : vector<64x1xf32> to vector<64x128xf32>
      %82 = arith.mulf %81, %80 : vector<64x128xf32>
      %cst_47 = arith.constant dense<0.000000e+00> : vector<128xf32>
      %83 = vector.multi_reduction <add>, %82, %cst_47 [0] : vector<64x128xf32> to vector<128xf32>
      %84 = vector.shape_cast %83 : vector<128xf32> to vector<1x128xf32>
      %85 = arith.addf %72, %84 : vector<1x128xf32>
      %c256 = arith.constant 256 : index
      %c0_48 = arith.constant 0 : index
      %86 = vector.load %arg8[%c256, %c0_48] : memref<768x128xf32, #tpu.memory_space<vmem>>, vector<64x128xf32>
      %cst_49 = arith.constant dense<0.000000e+00> : vector<64xf32>
      %87 = vector.multi_reduction <add>, %86, %cst_49 [1] : vector<64x128xf32> to vector<64xf32>
      %88 = vector.shape_cast %87 : vector<64xf32> to vector<64x1xf32>
      %cst_50 = arith.constant 3.906250e-03 : f32
      %89 = vector.broadcast %cst_50 : f32 to vector<64x1xf32>
      %90 = arith.mulf %88, %89 : vector<64x1xf32>
      %cst_51 = arith.constant 0.000000e+00 : f32
      %91 = vector.broadcast %cst_51 : f32 to vector<64x1xf32>
      %92 = arith.maximumf %90, %91 : vector<64x1xf32>
      %c256_52 = arith.constant 256 : index
      %c0_53 = arith.constant 0 : index
      %93 = vector.load %arg5[%c256_52, %c0_53] : memref<768x128xf32, #tpu.memory_space<vmem>>, vector<64x128xf32>
      %94 = vector.broadcast %92 : vector<64x1xf32> to vector<64x128xf32>
      %95 = arith.mulf %94, %93 : vector<64x128xf32>
      %cst_54 = arith.constant dense<0.000000e+00> : vector<128xf32>
      %96 = vector.multi_reduction <add>, %95, %cst_54 [0] : vector<64x128xf32> to vector<128xf32>
      %97 = vector.shape_cast %96 : vector<128xf32> to vector<1x128xf32>
      %98 = arith.addf %85, %97 : vector<1x128xf32>
      %c320 = arith.constant 320 : index
      %c0_55 = arith.constant 0 : index
      %99 = vector.load %arg8[%c320, %c0_55] : memref<768x128xf32, #tpu.memory_space<vmem>>, vector<64x128xf32>
      %cst_56 = arith.constant dense<0.000000e+00> : vector<64xf32>
      %100 = vector.multi_reduction <add>, %99, %cst_56 [1] : vector<64x128xf32> to vector<64xf32>
      %101 = vector.shape_cast %100 : vector<64xf32> to vector<64x1xf32>
      %cst_57 = arith.constant 3.906250e-03 : f32
      %102 = vector.broadcast %cst_57 : f32 to vector<64x1xf32>
      %103 = arith.mulf %101, %102 : vector<64x1xf32>
      %cst_58 = arith.constant 0.000000e+00 : f32
      %104 = vector.broadcast %cst_58 : f32 to vector<64x1xf32>
      %105 = arith.maximumf %103, %104 : vector<64x1xf32>
      %c320_59 = arith.constant 320 : index
      %c0_60 = arith.constant 0 : index
      %106 = vector.load %arg5[%c320_59, %c0_60] : memref<768x128xf32, #tpu.memory_space<vmem>>, vector<64x128xf32>
      %107 = vector.broadcast %105 : vector<64x1xf32> to vector<64x128xf32>
      %108 = arith.mulf %107, %106 : vector<64x128xf32>
      %cst_61 = arith.constant dense<0.000000e+00> : vector<128xf32>
      %109 = vector.multi_reduction <add>, %108, %cst_61 [0] : vector<64x128xf32> to vector<128xf32>
      %110 = vector.shape_cast %109 : vector<128xf32> to vector<1x128xf32>
      %111 = arith.addf %98, %110 : vector<1x128xf32>
      %c384 = arith.constant 384 : index
      %c0_62 = arith.constant 0 : index
      %112 = vector.load %arg8[%c384, %c0_62] : memref<768x128xf32, #tpu.memory_space<vmem>>, vector<64x128xf32>
      %cst_63 = arith.constant dense<0.000000e+00> : vector<64xf32>
      %113 = vector.multi_reduction <add>, %112, %cst_63 [1] : vector<64x128xf32> to vector<64xf32>
      %114 = vector.shape_cast %113 : vector<64xf32> to vector<64x1xf32>
      %cst_64 = arith.constant 3.906250e-03 : f32
      %115 = vector.broadcast %cst_64 : f32 to vector<64x1xf32>
      %116 = arith.mulf %114, %115 : vector<64x1xf32>
      %cst_65 = arith.constant 0.000000e+00 : f32
      %117 = vector.broadcast %cst_65 : f32 to vector<64x1xf32>
      %118 = arith.maximumf %116, %117 : vector<64x1xf32>
      %c384_66 = arith.constant 384 : index
      %c0_67 = arith.constant 0 : index
      %119 = vector.load %arg5[%c384_66, %c0_67] : memref<768x128xf32, #tpu.memory_space<vmem>>, vector<64x128xf32>
      %120 = vector.broadcast %118 : vector<64x1xf32> to vector<64x128xf32>
      %121 = arith.mulf %120, %119 : vector<64x128xf32>
      %cst_68 = arith.constant dense<0.000000e+00> : vector<128xf32>
      %122 = vector.multi_reduction <add>, %121, %cst_68 [0] : vector<64x128xf32> to vector<128xf32>
      %123 = vector.shape_cast %122 : vector<128xf32> to vector<1x128xf32>
      %124 = arith.addf %111, %123 : vector<1x128xf32>
      %c448 = arith.constant 448 : index
      %c0_69 = arith.constant 0 : index
      %125 = vector.load %arg8[%c448, %c0_69] : memref<768x128xf32, #tpu.memory_space<vmem>>, vector<64x128xf32>
      %cst_70 = arith.constant dense<0.000000e+00> : vector<64xf32>
      %126 = vector.multi_reduction <add>, %125, %cst_70 [1] : vector<64x128xf32> to vector<64xf32>
      %127 = vector.shape_cast %126 : vector<64xf32> to vector<64x1xf32>
      %cst_71 = arith.constant 3.906250e-03 : f32
      %128 = vector.broadcast %cst_71 : f32 to vector<64x1xf32>
      %129 = arith.mulf %127, %128 : vector<64x1xf32>
      %cst_72 = arith.constant 0.000000e+00 : f32
      %130 = vector.broadcast %cst_72 : f32 to vector<64x1xf32>
      %131 = arith.maximumf %129, %130 : vector<64x1xf32>
      %c448_73 = arith.constant 448 : index
      %c0_74 = arith.constant 0 : index
      %132 = vector.load %arg5[%c448_73, %c0_74] : memref<768x128xf32, #tpu.memory_space<vmem>>, vector<64x128xf32>
      %133 = vector.broadcast %131 : vector<64x1xf32> to vector<64x128xf32>
      %134 = arith.mulf %133, %132 : vector<64x128xf32>
      %cst_75 = arith.constant dense<0.000000e+00> : vector<128xf32>
      %135 = vector.multi_reduction <add>, %134, %cst_75 [0] : vector<64x128xf32> to vector<128xf32>
      %136 = vector.shape_cast %135 : vector<128xf32> to vector<1x128xf32>
      %137 = arith.addf %124, %136 : vector<1x128xf32>
      %c512 = arith.constant 512 : index
      %c0_76 = arith.constant 0 : index
      %138 = vector.load %arg8[%c512, %c0_76] : memref<768x128xf32, #tpu.memory_space<vmem>>, vector<64x128xf32>
      %cst_77 = arith.constant dense<0.000000e+00> : vector<64xf32>
      %139 = vector.multi_reduction <add>, %138, %cst_77 [1] : vector<64x128xf32> to vector<64xf32>
      %140 = vector.shape_cast %139 : vector<64xf32> to vector<64x1xf32>
      %cst_78 = arith.constant 3.906250e-03 : f32
      %141 = vector.broadcast %cst_78 : f32 to vector<64x1xf32>
      %142 = arith.mulf %140, %141 : vector<64x1xf32>
      %cst_79 = arith.constant 0.000000e+00 : f32
      %143 = vector.broadcast %cst_79 : f32 to vector<64x1xf32>
      %144 = arith.maximumf %142, %143 : vector<64x1xf32>
      %c512_80 = arith.constant 512 : index
      %c0_81 = arith.constant 0 : index
      %145 = vector.load %arg5[%c512_80, %c0_81] : memref<768x128xf32, #tpu.memory_space<vmem>>, vector<64x128xf32>
      %146 = vector.broadcast %144 : vector<64x1xf32> to vector<64x128xf32>
      %147 = arith.mulf %146, %145 : vector<64x128xf32>
      %cst_82 = arith.constant dense<0.000000e+00> : vector<128xf32>
      %148 = vector.multi_reduction <add>, %147, %cst_82 [0] : vector<64x128xf32> to vector<128xf32>
      %149 = vector.shape_cast %148 : vector<128xf32> to vector<1x128xf32>
      %150 = arith.addf %137, %149 : vector<1x128xf32>
      %c576 = arith.constant 576 : index
      %c0_83 = arith.constant 0 : index
      %151 = vector.load %arg8[%c576, %c0_83] : memref<768x128xf32, #tpu.memory_space<vmem>>, vector<64x128xf32>
      %cst_84 = arith.constant dense<0.000000e+00> : vector<64xf32>
      %152 = vector.multi_reduction <add>, %151, %cst_84 [1] : vector<64x128xf32> to vector<64xf32>
      %153 = vector.shape_cast %152 : vector<64xf32> to vector<64x1xf32>
      %cst_85 = arith.constant 3.906250e-03 : f32
      %154 = vector.broadcast %cst_85 : f32 to vector<64x1xf32>
      %155 = arith.mulf %153, %154 : vector<64x1xf32>
      %cst_86 = arith.constant 0.000000e+00 : f32
      %156 = vector.broadcast %cst_86 : f32 to vector<64x1xf32>
      %157 = arith.maximumf %155, %156 : vector<64x1xf32>
      %c576_87 = arith.constant 576 : index
      %c0_88 = arith.constant 0 : index
      %158 = vector.load %arg5[%c576_87, %c0_88] : memref<768x128xf32, #tpu.memory_space<vmem>>, vector<64x128xf32>
      %159 = vector.broadcast %157 : vector<64x1xf32> to vector<64x128xf32>
      %160 = arith.mulf %159, %158 : vector<64x128xf32>
      %cst_89 = arith.constant dense<0.000000e+00> : vector<128xf32>
      %161 = vector.multi_reduction <add>, %160, %cst_89 [0] : vector<64x128xf32> to vector<128xf32>
      %162 = vector.shape_cast %161 : vector<128xf32> to vector<1x128xf32>
      %163 = arith.addf %150, %162 : vector<1x128xf32>
      %c640 = arith.constant 640 : index
      %c0_90 = arith.constant 0 : index
      %164 = vector.load %arg8[%c640, %c0_90] : memref<768x128xf32, #tpu.memory_space<vmem>>, vector<64x128xf32>
      %cst_91 = arith.constant dense<0.000000e+00> : vector<64xf32>
      %165 = vector.multi_reduction <add>, %164, %cst_91 [1] : vector<64x128xf32> to vector<64xf32>
      %166 = vector.shape_cast %165 : vector<64xf32> to vector<64x1xf32>
      %cst_92 = arith.constant 3.906250e-03 : f32
      %167 = vector.broadcast %cst_92 : f32 to vector<64x1xf32>
      %168 = arith.mulf %166, %167 : vector<64x1xf32>
      %cst_93 = arith.constant 0.000000e+00 : f32
      %169 = vector.broadcast %cst_93 : f32 to vector<64x1xf32>
      %170 = arith.maximumf %168, %169 : vector<64x1xf32>
      %c640_94 = arith.constant 640 : index
      %c0_95 = arith.constant 0 : index
      %171 = vector.load %arg5[%c640_94, %c0_95] : memref<768x128xf32, #tpu.memory_space<vmem>>, vector<64x128xf32>
      %172 = vector.broadcast %170 : vector<64x1xf32> to vector<64x128xf32>
      %173 = arith.mulf %172, %171 : vector<64x128xf32>
      %cst_96 = arith.constant dense<0.000000e+00> : vector<128xf32>
      %174 = vector.multi_reduction <add>, %173, %cst_96 [0] : vector<64x128xf32> to vector<128xf32>
      %175 = vector.shape_cast %174 : vector<128xf32> to vector<1x128xf32>
      %176 = arith.addf %163, %175 : vector<1x128xf32>
      %c704 = arith.constant 704 : index
      %c0_97 = arith.constant 0 : index
      %177 = vector.load %arg8[%c704, %c0_97] : memref<768x128xf32, #tpu.memory_space<vmem>>, vector<64x128xf32>
      %cst_98 = arith.constant dense<0.000000e+00> : vector<64xf32>
      %178 = vector.multi_reduction <add>, %177, %cst_98 [1] : vector<64x128xf32> to vector<64xf32>
      %179 = vector.shape_cast %178 : vector<64xf32> to vector<64x1xf32>
      %cst_99 = arith.constant 3.906250e-03 : f32
      %180 = vector.broadcast %cst_99 : f32 to vector<64x1xf32>
      %181 = arith.mulf %179, %180 : vector<64x1xf32>
      %cst_100 = arith.constant 0.000000e+00 : f32
      %182 = vector.broadcast %cst_100 : f32 to vector<64x1xf32>
      %183 = arith.maximumf %181, %182 : vector<64x1xf32>
      %c704_101 = arith.constant 704 : index
      %c0_102 = arith.constant 0 : index
      %184 = vector.load %arg5[%c704_101, %c0_102] : memref<768x128xf32, #tpu.memory_space<vmem>>, vector<64x128xf32>
      %185 = vector.broadcast %183 : vector<64x1xf32> to vector<64x128xf32>
      %186 = arith.mulf %185, %184 : vector<64x128xf32>
      %cst_103 = arith.constant dense<0.000000e+00> : vector<128xf32>
      %187 = vector.multi_reduction <add>, %186, %cst_103 [0] : vector<64x128xf32> to vector<128xf32>
      %188 = vector.shape_cast %187 : vector<128xf32> to vector<1x128xf32>
      %189 = arith.addf %176, %188 : vector<1x128xf32>
      %190 = vector.shape_cast %189 : vector<1x128xf32> to vector<1x1x1x128xf32>
      %191 = vector.shape_cast %190 : vector<1x1x1x128xf32> to vector<1x1x1x128xf32>
      %192 = vector.broadcast %191 : vector<1x1x1x128xf32> to vector<1x1x8x128xf32>
      %c0_104 = arith.constant 0 : index
      %c0_105 = arith.constant 0 : index
      %c0_106 = arith.constant 0 : index
      %c0_107 = arith.constant 0 : index
      %193 = vector.load %arg6[%c0_104, %c0_105, %c0_106, %c0_107] : memref<1x1x8x128xf32, #tpu.memory_space<vmem>>, vector<1x1x8x128xf32>
      tpu.vector_store %arg6[%c0_104, %c0_105, %c0_106, %c0_107], %192 {strides = array<i32>} : memref<1x1x8x128xf32, #tpu.memory_space<vmem>>, vector<1x1x8x128xf32>,
    } else {
    }
    return
  }
  func.func @transform_0(%arg0: i32, %arg1: i32, %arg2: i32) -> (i32, i32, i32) {
    %c0_i32 = arith.constant 0 : i32
    %c0_i32_0 = arith.constant 0 : i32
    return %arg1, %c0_i32, %arg2 : i32, i32, i32
  }
  func.func @transform_1(%arg0: i32, %arg1: i32, %arg2: i32) -> (i32, i32) {
    %c0_i32 = arith.constant 0 : i32
    %c0_i32_0 = arith.constant 0 : i32
    return %arg0, %c0_i32 : i32, i32
  }
  func.func @transform_2(%arg0: i32, %arg1: i32, %arg2: i32) -> (i32, i32) {
    %c0_i32 = arith.constant 0 : i32
    %c0_i32_0 = arith.constant 0 : i32
    return %arg0, %c0_i32 : i32, i32
  }
  func.func @transform_3(%arg0: i32, %arg1: i32, %arg2: i32) -> (i32, i32, i32, i32) {
    %c0_i32 = arith.constant 0 : i32
    %c0_i32_0 = arith.constant 0 : i32
    %c0_i32_1 = arith.constant 0 : i32
    return %arg0, %arg1, %c0_i32, %c0_i32_0 : i32, i32, i32, i32
  }
}

</mosaic_0001>

<bundles_post_ra>
// kernel: my_ensemble_forward.1
= control target key start
LH: loop header
LB: loop body
LE: loop exit
PB: predicated region body
PF: predicated region fallthrough
CT: control target
= control target key end

     0   :  { %s1851_s12 = smov 0   ;;  %s1853_s13 = smov 0   ;;  %s2217_s0 = inlined_call_operand.vmem [shape: f32[2,3,256], index: 0, kind: input, shape index: {}]   ;;  %s2218_s1 = inlined_call_operand.vmem [shape: f32[1536,8], index: 1, kind: input, shape index: {}]   ;;  %s2219_s2 = inlined_call_operand.vmem [shape: f32[1536,128], index: 2, kind: input, shape index: {}]   ;;  %s2220_s3 = inlined_call_operand.vmem [shape: f32[2,2,8,128], index: 3, kind: output, shape index: {}]  }
   0x1   :  { %s1855_s14 = smov 0   ;;  %s1857_s15 = smov 0  }
   0x2   :  { %s1859_s16 = smov 0  }
   0x3 LB: > { %s28_s17 = sadd.s32 1, %s1816_s14  ;;  %s32_s18 = sadd.s32 1, %s1820_s15  ;;  %s1824_s16 = sphi %s1859_s16, %s13_s16   ;;  %s1820_s15 = sphi %s1857_s15, %s2224_s15   ;;  %s1816_s14 = sphi %s1855_s14, %s2223_s14   ;;  %s1812_s13 = sphi %s1853_s13, %s2222_s13   ;;  %s1808_s12 = sphi %s1851_s12, %s2221_s12  }
   0x4   : > { %p30_p0 = scmp.ge.s32.totalorder %s28_s17, 2  ;;  %p1660_p1 = scmp.ge.s32.totalorder %s1824_s16, 1 }
   0x5   : > { %p187_p2 = scmp.lt.s32.totalorder %s1824_s16, 5 }
   0x6   : > { %s2226_s17 = smov (%p30_p0, %s28_s17), 0  ;;  %s2228_s18 = smov (!%p30_p0, %s32_s18), %s1820_s15 }
   0x7   : > { %p188_p3 = pnand %p1660_p1, %p187_p2  ;;  %p34_p4 = scmp.ge.s32.totalorder %s2228_s18, 2 }
   0x8   : > { %s238_s19 = smul.u32 (!%p188_p3), 96, %s1812_s13  ;;  %p229_p5 = scmp.lt.s32.totalorder (!%p188_p3), %s1808_s12, 1  ;;  %v1830_v0 = vmov (!%p188_p3), 0.0  }
   0x9   : > { %s2230_s18 = smov (%p34_p4, %s2228_s18), 0  ;;  %191 = sbr.rel (%p188_p3) target bundleno = 663 (0x297), region = 32 }
   0xa   : > { %358 = vst [vmem:[#allocation2] sm:$0xff] (!%p188_p3), %v1830_v0  ;;  %262 = vst [vmem:[#allocation3] sm:$0xff] (!%p188_p3), %v1830_v0  ;;  %p239_p6 = scmp.lt.s32.totalorder (!%p188_p3), %s238_s19, 191  ;;  %p250_p7 = scmp.lt.s32.totalorder (!%p188_p3), %s1812_s13, 1 }
   0xb   : > { %263 = vst [vmem:[#allocation3 + $0x8] sm:$0xff] (!%p188_p3), %v1830_v0  ;;  %264 = vst [vmem:[#allocation3 + $0x10] sm:$0xff] (!%p188_p3), %v1830_v0  ;;  %s2012_s10 = smov (!%p188_p3), 0  }
   0xc   : > { %265 = vst [vmem:[#allocation3 + $0x18] sm:$0xff] (!%p188_p3), %v1830_v0  ;;  %266 = vst [vmem:[#allocation3 + $0x20] sm:$0xff] (!%p188_p3), %v1830_v0 }
   0xd   : > { %267 = vst [vmem:[#allocation3 + $0x28] sm:$0xff] (!%p188_p3), %v1830_v0  ;;  %268 = vst [vmem:[#allocation3 + $0x30] sm:$0xff] (!%p188_p3), %v1830_v0 }
   0xe   : > { %269 = vst [vmem:[#allocation3 + $0x38] sm:$0xff] (!%p188_p3), %v1830_v0  ;;  %270 = vst [vmem:[#allocation3 + $0x40] sm:$0xff] (!%p188_p3), %v1830_v0 }
   0xf   : > { %271 = vst [vmem:[#allocation3 + $0x48] sm:$0xff] (!%p188_p3), %v1830_v0  ;;  %272 = vst [vmem:[#allocation3 + $0x50] sm:$0xff] (!%p188_p3), %v1830_v0 }
  0x10   : > { %273 = vst [vmem:[#allocation3 + $0x58] sm:$0xff] %v1830_v0  ;;  %274 = vst [vmem:[#allocation3 + $0x60] sm:$0xff] %v1830_v0  ;;  %s2232_s12 = smov (!%p229_p5, %s1808_s12), 1  ;;  %s2234_s19 = smov (!%p239_p6, %s238_s19), 191 }
  0x11   : > { %275 = vst [vmem:[#allocation3 + $0x68] sm:$0xff] %v1830_v0  ;;  %276 = vst [vmem:[#allocation3 + $0x70] sm:$0xff] %v1830_v0  ;;  %s1686_s20 = sshll.u32 %s2232_s12, 3  ;;  %s1663_s21 = sshll.u32 %s2234_s19, 3 }
  0x12   : > { %277 = vst [vmem:[#allocation3 + $0x78] sm:$0xff] %v1830_v0  ;;  %278 = vst [vmem:[#allocation3 + $0x80] sm:$0xff] %v1830_v0  ;;  %s236_s24 = scalar_lea.vmem %s2217_s0, %s1686_s20  ;;  %s1999_s27 = scalar_lea.vmem %s2218_s1, %s1663_s21 }
  0x13   : > { %279 = vst [vmem:[#allocation3 + $0x88] sm:$0xff] %v1830_v0  ;;  %280 = vst [vmem:[#allocation3 + $0x90] sm:$0xff] %v1830_v0  ;;  %s2004_s30 = scalar_lea.vmem %s2219_s2, %s1663_s21  ;;  %v366_v1 = vld [vmem:[%s236_s24] sm:$0x7]  ;;  %v375_v2 = vld [vmem:[%s236_s24 + $0x4] sm:$0x7] }
  0x14   : > { %281 = vst [vmem:[#allocation3 + $0x98] sm:$0xff] %v1830_v0  ;;  %282 = vst [vmem:[#allocation3 + $0xa0] sm:$0xff] %v1830_v0  ;;  %s2236_s13 = smov (!%p250_p7, %s1812_s13), 1 }
  0x15   : > { %283 = vst [vmem:[#allocation3 + $0xa8] sm:$0xff] %v1830_v0  ;;  %284 = vst [vmem:[#allocation3 + $0xb0] sm:$0xff] %v1830_v0  ;;  %s1665_s4 = sshll.u32 %s2236_s13, 1 }
  0x16   : > { %285 = vst [vmem:[#allocation3 + $0xb8] sm:$0xff] %v1830_v0  ;;  %286 = vst [vmem:[#allocation3 + $0xc0] sm:$0xff] %v1830_v0  ;;  %s255_s5 = sadd.s32 %s1665_s4, %s2232_s12 }
  0x17   : > { %287 = vst [vmem:[#allocation3 + $0xc8] sm:$0xff] %v1830_v0  ;;  %288 = vst [vmem:[#allocation3 + $0xd0] sm:$0xff] %v1830_v0  ;;  %s1666_s6 = sshll.u32 %s255_s5, 3 }
  0x18   : > { %289 = vst [vmem:[#allocation3 + $0xd8] sm:$0xff] %v1830_v0  ;;  %290 = vst [vmem:[#allocation3 + $0xe0] sm:$0xff] %v1830_v0  ;;  %s2010_s9 = scalar_lea.vmem %s2220_s3, %s1666_s6 }
  0x19   : > { %291 = vst [vmem:[#allocation3 + $0xe8] sm:$0xff] %v1830_v0  ;;  %292 = vst [vmem:[#allocation3 + $0xf0] sm:$0xff] %v1830_v0 }
  0x1a   : > { %293 = vst [vmem:[#allocation3 + $0xf8] sm:$0xff] %v1830_v0  ;;  %294 = vst [vmem:[#allocation3 + $0x100] sm:$0xff] %v1830_v0 }
  0x1b   : > { %295 = vst [vmem:[#allocation3 + $0x108] sm:$0xff] %v1830_v0  ;;  %296 = vst [vmem:[#allocation3 + $0x110] sm:$0xff] %v1830_v0 }
  0x1c   : > { %297 = vst [vmem:[#allocation3 + $0x118] sm:$0xff] %v1830_v0  ;;  %298 = vst [vmem:[#allocation3 + $0x120] sm:$0xff] %v1830_v0 }
  0x1d   : > { %299 = vst [vmem:[#allocation3 + $0x128] sm:$0xff] %v1830_v0  ;;  %300 = vst [vmem:[#allocation3 + $0x130] sm:$0xff] %v1830_v0 }
  0x1e   : > { %301 = vst [vmem:[#allocation3 + $0x138] sm:$0xff] %v1830_v0  ;;  %302 = vst [vmem:[#allocation3 + $0x140] sm:$0xff] %v1830_v0 }
  0x1f   : > { %303 = vst [vmem:[#allocation3 + $0x148] sm:$0xff] %v1830_v0  ;;  %304 = vst [vmem:[#allocation3 + $0x150] sm:$0xff] %v1830_v0 }
  0x20   : > { %305 = vst [vmem:[#allocation3 + $0x158] sm:$0xff] %v1830_v0  ;;  %306 = vst [vmem:[#allocation3 + $0x160] sm:$0xff] %v1830_v0 }
  0x21   : > { %307 = vst [vmem:[#allocation3 + $0x168] sm:$0xff] %v1830_v0  ;;  %308 = vst [vmem:[#allocation3 + $0x170] sm:$0xff] %v1830_v0 }
  0x22   : > { %309 = vst [vmem:[#allocation3 + $0x178] sm:$0xff] %v1830_v0  ;;  %310 = vst [vmem:[#allocation3 + $0x180] sm:$0xff] %v1830_v0 }
  0x23   : > { %311 = vst [vmem:[#allocation3 + $0x188] sm:$0xff] %v1830_v0  ;;  %312 = vst [vmem:[#allocation3 + $0x190] sm:$0xff] %v1830_v0 }
  0x24   : > { %313 = vst [vmem:[#allocation3 + $0x198] sm:$0xff] %v1830_v0  ;;  %314 = vst [vmem:[#allocation3 + $0x1a0] sm:$0xff] %v1830_v0 }
  0x25   : > { %315 = vst [vmem:[#allocation3 + $0x1a8] sm:$0xff] %v1830_v0  ;;  %316 = vst [vmem:[#allocation3 + $0x1b0] sm:$0xff] %v1830_v0 }
  0x26   : > { %317 = vst [vmem:[#allocation3 + $0x1b8] sm:$0xff] %v1830_v0  ;;  %318 = vst [vmem:[#allocation3 + $0x1c0] sm:$0xff] %v1830_v0 }
  0x27   : > { %319 = vst [vmem:[#allocation3 + $0x1c8] sm:$0xff] %v1830_v0  ;;  %320 = vst [vmem:[#allocation3 + $0x1d0] sm:$0xff] %v1830_v0 }
  0x28   : > { %321 = vst [vmem:[#allocation3 + $0x1d8] sm:$0xff] %v1830_v0  ;;  %322 = vst [vmem:[#allocation3 + $0x1e0] sm:$0xff] %v1830_v0 }
  0x29   : > { %323 = vst [vmem:[#allocation3 + $0x1e8] sm:$0xff] %v1830_v0  ;;  %324 = vst [vmem:[#allocation3 + $0x1f0] sm:$0xff] %v1830_v0 }
  0x2a   : > { %325 = vst [vmem:[#allocation3 + $0x1f8] sm:$0xff] %v1830_v0  ;;  %326 = vst [vmem:[#allocation3 + $0x200] sm:$0xff] %v1830_v0 }
  0x2b   : > { %327 = vst [vmem:[#allocation3 + $0x208] sm:$0xff] %v1830_v0  ;;  %328 = vst [vmem:[#allocation3 + $0x210] sm:$0xff] %v1830_v0 }
  0x2c   : > { %329 = vst [vmem:[#allocation3 + $0x218] sm:$0xff] %v1830_v0  ;;  %330 = vst [vmem:[#allocation3 + $0x220] sm:$0xff] %v1830_v0 }
  0x2d   : > { %331 = vst [vmem:[#allocation3 + $0x228] sm:$0xff] %v1830_v0  ;;  %332 = vst [vmem:[#allocation3 + $0x230] sm:$0xff] %v1830_v0 }
  0x2e   : > { %333 = vst [vmem:[#allocation3 + $0x238] sm:$0xff] %v1830_v0  ;;  %334 = vst [vmem:[#allocation3 + $0x240] sm:$0xff] %v1830_v0 }
  0x2f   : > { %335 = vst [vmem:[#allocation3 + $0x248] sm:$0xff] %v1830_v0  ;;  %336 = vst [vmem:[#allocation3 + $0x250] sm:$0xff] %v1830_v0 }
  0x30   : > { %337 = vst [vmem:[#allocation3 + $0x258] sm:$0xff] %v1830_v0  ;;  %338 = vst [vmem:[#allocation3 + $0x260] sm:$0xff] %v1830_v0 }
  0x31   : > { %339 = vst [vmem:[#allocation3 + $0x268] sm:$0xff] %v1830_v0  ;;  %340 = vst [vmem:[#allocation3 + $0x270] sm:$0xff] %v1830_v0 }
  0x32   : > { %341 = vst [vmem:[#allocation3 + $0x278] sm:$0xff] %v1830_v0  ;;  %342 = vst [vmem:[#allocation3 + $0x280] sm:$0xff] %v1830_v0 }
  0x33   : > { %343 = vst [vmem:[#allocation3 + $0x288] sm:$0xff] %v1830_v0  ;;  %344 = vst [vmem:[#allocation3 + $0x290] sm:$0xff] %v1830_v0 }
  0x34   : > { %345 = vst [vmem:[#allocation3 + $0x298] sm:$0xff] %v1830_v0  ;;  %346 = vst [vmem:[#allocation3 + $0x2a0] sm:$0xff] %v1830_v0 }
  0x35   : > { %347 = vst [vmem:[#allocation3 + $0x2a8] sm:$0xff] %v1830_v0  ;;  %348 = vst [vmem:[#allocation3 + $0x2b0] sm:$0xff] %v1830_v0 }
  0x36   : > { %349 = vst [vmem:[#allocation3 + $0x2b8] sm:$0xff] %v1830_v0  ;;  %350 = vst [vmem:[#allocation3 + $0x2c0] sm:$0xff] %v1830_v0 }
  0x37   : > { %351 = vst [vmem:[#allocation3 + $0x2c8] sm:$0xff] %v1830_v0  ;;  %352 = vst [vmem:[#allocation3 + $0x2d0] sm:$0xff] %v1830_v0 }
  0x38   : > { %353 = vst [vmem:[#allocation3 + $0x2d8] sm:$0xff] %v1830_v0  ;;  %354 = vst [vmem:[#allocation3 + $0x2e0] sm:$0xff] %v1830_v0 }
  0x39   : > { %355 = vst [vmem:[#allocation3 + $0x2e8] sm:$0xff] %v1830_v0  ;;  %356 = vst [vmem:[#allocation3 + $0x2f0] sm:$0xff] %v1830_v0 }
  0x3a   : > { %357 = vst [vmem:[#allocation3 + $0x2f8] sm:$0xff] %v1830_v0  ;;  %359 = vst [vmem:[#allocation2 + $0x8] sm:$0xff] %v1830_v0 }
  0x3b   : > { %370 = vst [vmem:[#allocation2] sm:$0x7] %v366_v1  ;;  %379 = vst [vmem:[#allocation2 + $0x8] sm:$0x7] %v375_v2 }
  0x3c LB: >> { %s1667_s11 = sshll.u32 %s1828_s10, 6  ;;  %vm397_vm0 = vcmask 64512   ;;  %s385_s10 = sadd.s32 1, %s1828_s10   ;;  %s1828_s10 = sphi %s2012_s10, %s385_s10  }
  0x3d   : >> { %s387_s12 = scalar_lea.vmem %s1999_s27, %s1667_s11  ;;  %s2039_s13 = scalar_lea.vmem [#allocation3], %s1667_s11 }
  0x3e   : >> { %v388_v5 = vld [vmem:[%s387_s12] sm:$0xff]  ;;  %v389_v6 = vld [vmem:[%s387_s12 + $0x8] sm:$0xff]  ;;  %v390_v7 = vld [vmem:[%s387_s12 + $0x10] sm:$0xff]  ;;  %p382_p8 = scmp.ge.s32.totalorder %s385_s10, 12  }
  0x3f   : >> { %1707 = vmatprep.mubr.msk.f32.mxu0 %vm397_vm0, %v388_v5  ;;  %1721 = vmatprep.mubr.msk.f32.mxu1 %vm397_vm0, %v388_v5  ;;  %v391_v8 = vld [vmem:[%s387_s12 + $0x18] sm:$0xff]  ;;  %v392_v9 = vld [vmem:[%s387_s12 + $0x20] sm:$0xff]  ;;  %v393_v10 = vld [vmem:[%s387_s12 + $0x28] sm:$0xff] }
  0x40   : >> { %v394_v11 = vld [vmem:[%s387_s12 + $0x30] sm:$0xff]  ;;  %v395_v12 = vld [vmem:[%s387_s12 + $0x38] sm:$0xff] }
  0x41   : >> { %v667_v19 = vld [vmem:[%s2039_s13 + $0x8] sm:$0xff]  ;;  %v666_v23 = vld [vmem:[%s2039_s13] sm:$0xff]  ;;  %v669_v33 = vld [vmem:[%s2039_s13 + $0x18] sm:$0xff] }
  0x42   : >> { %v396_v3 = vld [vmem:[#allocation2] sm:$0xff]  ;;  %v543_v4 = vld [vmem:[#allocation2 + $0x8] sm:$0xff]  ;;  %v668_v37 = vld [vmem:[%s2039_s13 + $0x10] sm:$0xff] }
  0x43   : >> { %1705 = vmatprep.subr.mxu0 %v396_v3  ;;  %1719 = vmatprep.subr.mxu1 %v543_v4  ;;  %v671_v47 = vld [vmem:[%s2039_s13 + $0x28] sm:$0xff]  ;;  %v670_v51 = vld [vmem:[%s2039_s13 + $0x20] sm:$0xff]  ;;  %v673_v61 = vld [vmem:[%s2039_s13 + $0x38] sm:$0xff] }
  0x44   : >> { %1706 = vmatpush3.msra.mxu0 %v396_v3  ;;  %1720 = vmatpush3.msra.mxu1 %v543_v4  ;;  %v672_v1 = vld [vmem:[%s2039_s13 + $0x30] sm:$0xff] }
  0x45   : >> { %1708 = vmatmul.mubr.msk.f32.vlgmr.msra.gmra.mrb[0].mxu0 %vm397_vm0, %v389_v6  ;;  %1722 = vmatmul.mubr.msk.f32.vlgmr.msra.gmra.mrb[0].mxu1 %vm397_vm0, %v389_v6 }
  0x46   : >> { %1710 = vmatprep.mubr.msk.f32.mxu0 %vm397_vm0, %v390_v7  ;;  %1724 = vmatprep.mubr.msk.f32.mxu1 %vm397_vm0, %v390_v7 }
  0x49   : >> { %1711 = vmatmul.mubr.msk.f32.gmra.mrb[2].mxu0 %vm397_vm0, %v391_v8  ;;  %1725 = vmatmul.mubr.msk.f32.gmra.mrb[2].mxu1 %vm397_vm0, %v391_v8 }
  0x4a   : >> { %1713 = vmatprep.mubr.msk.f32.mxu0 %vm397_vm0, %v392_v9  ;;  %1727 = vmatprep.mubr.msk.f32.mxu1 %vm397_vm0, %v392_v9 }
  0x4d   : >> { %1714 = vmatmul.mubr.msk.f32.gmra.mrb[4].mxu0 %vm397_vm0, %v393_v10  ;;  %1728 = vmatmul.mubr.msk.f32.gmra.mrb[4].mxu1 %vm397_vm0, %v393_v10 }
  0x4e   : >> { %1716 = vmatprep.mubr.msk.f32.mxu0 %vm397_vm0, %v394_v11  ;;  %1730 = vmatprep.mubr.msk.f32.mxu1 %vm397_vm0, %v394_v11 }
  0x51   : >> { %1717 = vmatmul.mubr.msk.f32.gmra.mrb[6].mxu0 %vm397_vm0, %v395_v12  ;;  %1731 = vmatmul.mubr.msk.f32.gmra.mrb[6].mxu1 %vm397_vm0, %v395_v12 }
 0x118   : >> { %v1709_v13 = vpop.f32.mrb[0].mxu0  ;;  %v1723_v14 = vpop.f32.mrb[0].mxu1 }
 0x119   : >> { %v528_v15 = vmax.f32 %v1709_v13, 0.0  ;;  %v650_v16 = vmax.f32 %v1723_v14, 0.0  ;;  %v488_v17 = vpop.f32.mrb[1].mxu0  ;;  %v610_v18 = vpop.f32.mrb[1].mxu1 }
 0x11a   : >> { %v527_v20 = vmax.f32 %v488_v17, 0.0  ;;  %v649_v21 = vmax.f32 %v610_v18, 0.0 }
 0x11b   : >> { %v658_v22 = vadd.f32 %v650_v16, %v528_v15 }
 0x11c   : >> { %v657_v24 = vadd.f32 %v649_v21, %v527_v20  ;;  %v1712_v25 = vpop.f32.mrb[2].mxu0  ;;  %v1726_v26 = vpop.f32.mrb[2].mxu1 }
 0x11d   : >> { %v675_v27 = vadd.f32 %v667_v19, %v658_v22  ;;  %v530_v28 = vmax.f32 %v1712_v25, 0.0  ;;  %v652_v29 = vmax.f32 %v1726_v26, 0.0  ;;  %v498_v30 = vpop.f32.mrb[3].mxu0  ;;  %v620_v31 = vpop.f32.mrb[3].mxu1 }
 0x11e   : >> { %v674_v32 = vadd.f32 %v666_v23, %v657_v24  ;;  %v529_v34 = vmax.f32 %v498_v30, 0.0  ;;  %v651_v35 = vmax.f32 %v620_v31, 0.0 }
 0x11f   : >> { %683 = vst [vmem:[%s2039_s13 + $0x8] sm:$0xff] %v675_v27  ;;  %v660_v36 = vadd.f32 %v652_v29, %v530_v28 }
 0x120   : >> { %682 = vst [vmem:[%s2039_s13] sm:$0xff] %v674_v32  ;;  %v659_v38 = vadd.f32 %v651_v35, %v529_v34  ;;  %v1715_v39 = vpop.f32.mrb[4].mxu0  ;;  %v1729_v40 = vpop.f32.mrb[4].mxu1 }
 0x121   : >> { %v677_v41 = vadd.f32 %v669_v33, %v660_v36  ;;  %v532_v42 = vmax.f32 %v1715_v39, 0.0  ;;  %v654_v43 = vmax.f32 %v1729_v40, 0.0  ;;  %v508_v44 = vpop.f32.mrb[5].mxu0  ;;  %v630_v45 = vpop.f32.mrb[5].mxu1 }
 0x122   : >> { %v676_v46 = vadd.f32 %v668_v37, %v659_v38  ;;  %v531_v48 = vmax.f32 %v508_v44, 0.0  ;;  %v653_v49 = vmax.f32 %v630_v45, 0.0 }
 0x123   : >> { %685 = vst [vmem:[%s2039_s13 + $0x18] sm:$0xff] %v677_v41  ;;  %v662_v50 = vadd.f32 %v654_v43, %v532_v42 }
 0x124   : >> { %684 = vst [vmem:[%s2039_s13 + $0x10] sm:$0xff] %v676_v46  ;;  %v661_v52 = vadd.f32 %v653_v49, %v531_v48  ;;  %v1718_v53 = vpop.f32.mrb[6].mxu0  ;;  %v1732_v54 = vpop.f32.mrb[6].mxu1 }
 0x125   : >> { %v679_v55 = vadd.f32 %v671_v47, %v662_v50  ;;  %v534_v56 = vmax.f32 %v1718_v53, 0.0  ;;  %v656_v57 = vmax.f32 %v1732_v54, 0.0  ;;  %v518_v58 = vpop.f32.mrb[7].mxu0  ;;  %v640_v59 = vpop.f32.mrb[7].mxu1 }
 0x126   : >> { %v678_v60 = vadd.f32 %v670_v51, %v661_v52  ;;  %v533_v62 = vmax.f32 %v518_v58, 0.0  ;;  %v655_v63 = vmax.f32 %v640_v59, 0.0  ;;  %384 = sbr.rel (!%p382_p8) target bundleno = 60 (0x3c), region = 85 }
 0x127   : >> { %687 = vst [vmem:[%s2039_s13 + $0x28] sm:$0xff] %v679_v55  ;;  %v664_v0 = vadd.f32 %v656_v57, %v534_v56 }
 0x128   : >> { %686 = vst [vmem:[%s2039_s13 + $0x20] sm:$0xff] %v678_v60  ;;  %v663_v2 = vadd.f32 %v655_v63, %v533_v62 }
 0x129   : >> { %v681_v3 = vadd.f32 %v673_v61, %v664_v0 }
 0x12a   : >> { %v680_v4 = vadd.f32 %v672_v1, %v663_v2 }
 0x12b   : >> { %689 = vst [vmem:[%s2039_s13 + $0x38] sm:$0xff] %v681_v3 }
 0x12c   : >> { %688 = vst [vmem:[%s2039_s13 + $0x30] sm:$0xff] %v680_v4 }
 0x133   : > { %v695_v5 = vld [vmem:[#allocation3 + $0x10] sm:$0xff]  ;;  %v693_v6 = vld [vmem:[#allocation3] sm:$0xff]  ;;  %v696_v7 = vld [vmem:[#allocation3 + $0x18] sm:$0xff] }
 0x134   : > { %705 = vadd.xlane.f32.xlu1 %v695_v5  ;;  %701 = vadd.xlane.f32.xlu0 %v693_v6  ;;  %v694_v8 = vld [vmem:[#allocation3 + $0x8] sm:$0xff]  ;;  %v697_v10 = vld [vmem:[#allocation3 + $0x20] sm:$0xff]  ;;  %v700_v11 = vld [vmem:[#allocation3 + $0x38] sm:$0xff] }
 0x135   : > { %v698_v9 = vld [vmem:[#allocation3 + $0x28] sm:$0xff]  ;;  %v699_v12 = vld [vmem:[#allocation3 + $0x30] sm:$0xff]  ;;  %v763_v14 = vld [vmem:[#allocation3 + $0x40] sm:$0xff] }
 0x136   : > { %v764_v13 = vld [vmem:[#allocation3 + $0x48] sm:$0xff]  ;;  %v766_v15 = vld [vmem:[#allocation3 + $0x58] sm:$0xff]  ;;  %v765_v16 = vld [vmem:[#allocation3 + $0x50] sm:$0xff] }
 0x137   : > { %v768_v17 = vld [vmem:[#allocation3 + $0x68] sm:$0xff]  ;;  %v767_v18 = vld [vmem:[#allocation3 + $0x60] sm:$0xff]  ;;  %v770_v19 = vld [vmem:[#allocation3 + $0x78] sm:$0xff] }
 0x138   : > { %707 = vadd.xlane.f32.xlu1 %v696_v7  ;;  %703 = vadd.xlane.f32.xlu0 %v694_v8  ;;  %v769_v20 = vld [vmem:[#allocation3 + $0x70] sm:$0xff]  ;;  %v834_v21 = vld [vmem:[#allocation3 + $0x88] sm:$0xff]  ;;  %v833_v22 = vld [vmem:[#allocation3 + $0x80] sm:$0xff] }
 0x139   : > { %v836_v23 = vld [vmem:[#allocation3 + $0x98] sm:$0xff]  ;;  %v835_v24 = vld [vmem:[#allocation3 + $0x90] sm:$0xff]  ;;  %v838_v25 = vld [vmem:[#allocation3 + $0xa8] sm:$0xff] }
 0x13a   : > { %v837_v26 = vld [vmem:[#allocation3 + $0xa0] sm:$0xff]  ;;  %v840_v27 = vld [vmem:[#allocation3 + $0xb8] sm:$0xff]  ;;  %v839_v28 = vld [vmem:[#allocation3 + $0xb0] sm:$0xff] }
 0x13b   : > { %v904_v29 = vld [vmem:[#allocation3 + $0xc8] sm:$0xff]  ;;  %v903_v30 = vld [vmem:[#allocation3 + $0xc0] sm:$0xff]  ;;  %v906_v31 = vld [vmem:[#allocation3 + $0xd8] sm:$0xff] }
 0x13c   : > { %711 = vadd.xlane.f32.xlu1 %v698_v9  ;;  %709 = vadd.xlane.f32.xlu0 %v697_v10  ;;  %v905_v32 = vld [vmem:[#allocation3 + $0xd0] sm:$0xff]  ;;  %v908_v33 = vld [vmem:[#allocation3 + $0xe8] sm:$0xff]  ;;  %v907_v34 = vld [vmem:[#allocation3 + $0xe0] sm:$0xff] }
 0x13d   : > { %v910_v35 = vld [vmem:[#allocation3 + $0xf8] sm:$0xff]  ;;  %v909_v36 = vld [vmem:[#allocation3 + $0xf0] sm:$0xff]  ;;  %v974_v37 = vld [vmem:[#allocation3 + $0x108] sm:$0xff] }
 0x13e   : > { %v973_v38 = vld [vmem:[#allocation3 + $0x100] sm:$0xff]  ;;  %v976_v39 = vld [vmem:[#allocation3 + $0x118] sm:$0xff]  ;;  %v975_v40 = vld [vmem:[#allocation3 + $0x110] sm:$0xff] }
 0x13f   : > { %v1043_v41 = vld [vmem:[#allocation3 + $0x140] sm:$0xff]  ;;  %v1045_v43 = vld [vmem:[#allocation3 + $0x150] sm:$0xff]  ;;  %v1044_v44 = vld [vmem:[#allocation3 + $0x148] sm:$0xff] }
 0x140   : > { %715 = vadd.xlane.f32.xlu1 %v700_v11  ;;  %713 = vadd.xlane.f32.xlu0 %v699_v12  ;;  %v977_v42 = vld [vmem:[#allocation3 + $0x120] sm:$0xff]  ;;  %v1114_v45 = vld [vmem:[#allocation3 + $0x188] sm:$0xff]  ;;  %v1115_v47 = vld [vmem:[#allocation3 + $0x190] sm:$0xff] }
 0x141   : > { %v1113_v46 = vld [vmem:[#allocation3 + $0x180] sm:$0xff]  ;;  %v1046_v48 = vld [vmem:[#allocation3 + $0x158] sm:$0xff]  ;;  %v1184_v49 = vld [vmem:[#allocation3 + $0x1c8] sm:$0xff] }
 0x142   : > { %v1183_v50 = vld [vmem:[#allocation3 + $0x1c0] sm:$0xff]  ;;  %v978_v52 = vld [vmem:[#allocation3 + $0x128] sm:$0xff]  ;;  %v1185_v53 = vld [vmem:[#allocation3 + $0x1d0] sm:$0xff] }
 0x143   : > { %v1047_v51 = vld [vmem:[#allocation3 + $0x160] sm:$0xff]  ;;  %v1116_v54 = vld [vmem:[#allocation3 + $0x198] sm:$0xff]  ;;  %v1254_v55 = vld [vmem:[#allocation3 + $0x208] sm:$0xff] }
 0x144   : > { %773 = vadd.xlane.f32.xlu1 %v764_v13  ;;  %771 = vadd.xlane.f32.xlu0 %v763_v14  ;;  %v1253_v56 = vld [vmem:[#allocation3 + $0x200] sm:$0xff]  ;;  %v1048_v57 = vld [vmem:[#allocation3 + $0x168] sm:$0xff]  ;;  %v979_v58 = vld [vmem:[#allocation3 + $0x130] sm:$0xff] }
 0x145   : > { %v1186_v59 = vld [vmem:[#allocation3 + $0x1d8] sm:$0xff]  ;;  %v1117_v60 = vld [vmem:[#allocation3 + $0x1a0] sm:$0xff]  ;;  %v1255_v62 = vld [vmem:[#allocation3 + $0x210] sm:$0xff] }
 0x146   : > { %v1323_v61 = vld [vmem:[#allocation3 + $0x240] sm:$0xff]  ;;  %v980_v63 = vld [vmem:[#allocation3 + $0x138] sm:$0xff]  ;;  %v1324_v0 = vld [vmem:[#allocation3 + $0x248] sm:$0xff] }
 0x147   : > { %v1118_v1 = vld [vmem:[#allocation3 + $0x1a8] sm:$0xff]  ;;  %v1049_v2 = vld [vmem:[#allocation3 + $0x170] sm:$0xff]  ;;  %v1256_v3 = vld [vmem:[#allocation3 + $0x218] sm:$0xff] }
 0x148   : > { %777 = vadd.xlane.f32.xlu1 %v766_v15  ;;  %775 = vadd.xlane.f32.xlu0 %v765_v16  ;;  %v1187_v4 = vld [vmem:[#allocation3 + $0x1e0] sm:$0xff]  ;;  %v1325_v6 = vld [vmem:[#allocation3 + $0x250] sm:$0xff]  ;;  %v1050_v7 = vld [vmem:[#allocation3 + $0x178] sm:$0xff] }
 0x149   : > { %v1393_v5 = vld [vmem:[#allocation3 + $0x280] sm:$0xff]  ;;  %v1394_v8 = vld [vmem:[#allocation3 + $0x288] sm:$0xff]  ;;  %v1119_v10 = vld [vmem:[#allocation3 + $0x1b0] sm:$0xff] }
 0x14a   : > { %v1188_v9 = vld [vmem:[#allocation3 + $0x1e8] sm:$0xff]  ;;  %v1326_v11 = vld [vmem:[#allocation3 + $0x258] sm:$0xff]  ;;  %v1257_v12 = vld [vmem:[#allocation3 + $0x220] sm:$0xff] }
 0x14b   : > { %v1463_v15 = vld [vmem:[#allocation3 + $0x2c0] sm:$0xff]  ;;  %v1395_v16 = vld [vmem:[#allocation3 + $0x290] sm:$0xff] }
 0x14c   : > { %781 = vadd.xlane.f32.xlu1 %v768_v17  ;;  %779 = vadd.xlane.f32.xlu0 %v767_v18 }
 0x150   : > { %785 = vadd.xlane.f32.xlu1 %v770_v19  ;;  %783 = vadd.xlane.f32.xlu0 %v769_v20 }
 0x154   : > { %843 = vadd.xlane.f32.xlu1 %v834_v21  ;;  %841 = vadd.xlane.f32.xlu0 %v833_v22  ;;  %v1120_v22 = vld [vmem:[#allocation3 + $0x1b8] sm:$0xff] }
 0x158   : > { %847 = vadd.xlane.f32.xlu1 %v836_v23  ;;  %845 = vadd.xlane.f32.xlu0 %v835_v24  ;;  %v1464_v23 = vld [vmem:[#allocation3 + $0x2c8] sm:$0xff]  ;;  %v733_v24 = vld [vmem:[%s2004_s30] sm:$0xff] }
 0x15c   : > { %851 = vadd.xlane.f32.xlu1 %v838_v25  ;;  %849 = vadd.xlane.f32.xlu0 %v837_v26 }
 0x160   : > { %855 = vadd.xlane.f32.xlu1 %v840_v27  ;;  %853 = vadd.xlane.f32.xlu0 %v839_v28  ;;  %v734_v27 = vld [vmem:[%s2004_s30 + $0x8] sm:$0xff] }
 0x164   : > { %913 = vadd.xlane.f32.xlu1 %v904_v29  ;;  %911 = vadd.xlane.f32.xlu0 %v903_v30  ;;  %v735_v30 = vld [vmem:[%s2004_s30 + $0x10] sm:$0xff] }
 0x168   : > { %917 = vadd.xlane.f32.xlu1 %v906_v31  ;;  %915 = vadd.xlane.f32.xlu0 %v905_v32 }
 0x16c   : > { %921 = vadd.xlane.f32.xlu1 %v908_v33  ;;  %919 = vadd.xlane.f32.xlu0 %v907_v34  ;;  %v1258_v34 = vld [vmem:[#allocation3 + $0x228] sm:$0xff] }
 0x170   : > { %925 = vadd.xlane.f32.xlu1 %v910_v35  ;;  %923 = vadd.xlane.f32.xlu0 %v909_v36  ;;  %v1189_v35 = vld [vmem:[#allocation3 + $0x1f0] sm:$0xff] }
 0x174   : > { %983 = vadd.xlane.f32.xlu1 %v974_v37  ;;  %981 = vadd.xlane.f32.xlu0 %v973_v38 }
 0x178   : > { %987 = vadd.xlane.f32.xlu1 %v976_v39  ;;  %985 = vadd.xlane.f32.xlu0 %v975_v40  ;;  %v736_v40 = vld [vmem:[%s2004_s30 + $0x18] sm:$0xff] }
 0x17c   : > { %1051 = vadd.xlane.f32.xlu1 %v1043_v41  ;;  %989 = vadd.xlane.f32.xlu0 %v977_v42 }
 0x180   : > { %1055 = vadd.xlane.f32.xlu1 %v1045_v43  ;;  %1053 = vadd.xlane.f32.xlu0 %v1044_v44  ;;  %v737_v44 = vld [vmem:[%s2004_s30 + $0x20] sm:$0xff] }
 0x184   : > { %1123 = vadd.xlane.f32.xlu1 %v1114_v45  ;;  %1121 = vadd.xlane.f32.xlu0 %v1113_v46 }
 0x188   : > { %1125 = vadd.xlane.f32.xlu1 %v1115_v47  ;;  %1057 = vadd.xlane.f32.xlu0 %v1046_v48  ;;  %v1396_v47 = vld [vmem:[#allocation3 + $0x298] sm:$0xff]  ;;  %v1327_v48 = vld [vmem:[#allocation3 + $0x260] sm:$0xff] }
 0x18c   : > { %1193 = vadd.xlane.f32.xlu1 %v1184_v49  ;;  %1191 = vadd.xlane.f32.xlu0 %v1183_v50 }
 0x190   : > { %1059 = vadd.xlane.f32.xlu1 %v1047_v51  ;;  %991 = vadd.xlane.f32.xlu0 %v978_v52 }
 0x194   : > { %1195 = vadd.xlane.f32.xlu1 %v1185_v53  ;;  %1127 = vadd.xlane.f32.xlu0 %v1116_v54  ;;  %v738_v53 = vld [vmem:[%s2004_s30 + $0x28] sm:$0xff] }
 0x198   : > { %1263 = vadd.xlane.f32.xlu1 %v1254_v55  ;;  %1261 = vadd.xlane.f32.xlu0 %v1253_v56 }
 0x19c   : > { %1061 = vadd.xlane.f32.xlu1 %v1048_v57  ;;  %993 = vadd.xlane.f32.xlu0 %v979_v58  ;;  %v739_v58 = vld [vmem:[%s2004_s30 + $0x30] sm:$0xff] }
 0x1a0   : > { %1197 = vadd.xlane.f32.xlu1 %v1186_v59  ;;  %1129 = vadd.xlane.f32.xlu0 %v1117_v60 }
 0x1a4   : > { %1331 = vadd.xlane.f32.xlu1 %v1323_v61  ;;  %1265 = vadd.xlane.f32.xlu0 %v1255_v62  ;;  %v1190_v62 = vld [vmem:[#allocation3 + $0x1f8] sm:$0xff] }
 0x1a8   : > { %995 = vadd.xlane.f32.xlu1 %v980_v63  ;;  %1333 = vadd.xlane.f32.xlu0 %v1324_v0  ;;  %v1465_v63 = vld [vmem:[#allocation3 + $0x2d0] sm:$0xff] }
 0x1ac   : > { %1131 = vadd.xlane.f32.xlu1 %v1118_v1  ;;  %1063 = vadd.xlane.f32.xlu0 %v1049_v2  ;;  %v740_v2 = vld [vmem:[%s2004_s30 + $0x38] sm:$0xff] }
 0x1b0   : > { %1267 = vadd.xlane.f32.xlu1 %v1256_v3  ;;  %1199 = vadd.xlane.f32.xlu0 %v1187_v4 }
 0x1b4   : > { %1401 = vadd.xlane.f32.xlu1 %v1393_v5  ;;  %1335 = vadd.xlane.f32.xlu0 %v1325_v6  ;;  %v804_v5 = vld [vmem:[%s2004_s30 + $0x48] sm:$0xff]  ;;  %v803_v6 = vld [vmem:[%s2004_s30 + $0x40] sm:$0xff] }
 0x1b8   : > { %1065 = vadd.xlane.f32.xlu1 %v1050_v7  ;;  %1403 = vadd.xlane.f32.xlu0 %v1394_v8 }
 0x1bc   : > { %1201 = vadd.xlane.f32.xlu1 %v1188_v9  ;;  %1133 = vadd.xlane.f32.xlu0 %v1119_v10 }
 0x1c0   : > { %1337 = vadd.xlane.f32.xlu1 %v1326_v11  ;;  %1269 = vadd.xlane.f32.xlu0 %v1257_v12 }
 0x1c1   : > { %v706_v13 = vpop.xlane.xlu1 %705  ;;  %v702_v14 = vpop.xlane.xlu0 %701 }
 0x1c2   : > { %v717_v17 = vmul.f32 0.00390625, %v702_v14  ;;  %v719_v18 = vmul.f32 0.00390625, %v706_v13  ;;  %v1328_v14 = vld [vmem:[#allocation3 + $0x268] sm:$0xff] }
 0x1c4   : > { %1471 = vadd.xlane.f32.xlu1 %v1463_v15  ;;  %1405 = vadd.xlane.f32.xlu0 %v1395_v16  ;;  %v725_v19 = vmax.f32 %v717_v17, 0.0  ;;  %v727_v28 = vmax.f32 %v719_v18, 0.0  ;;  %v1259_v15 = vld [vmem:[#allocation3 + $0x230] sm:$0xff] }
 0x1c5   : > { %v708_v20 = vpop.xlane.xlu1 %707  ;;  %v704_v21 = vpop.xlane.xlu0 %703 }
 0x1c6   : > { %v720_v25 = vmul.f32 0.00390625, %v708_v20  ;;  %v718_v26 = vmul.f32 0.00390625, %v704_v21  ;;  %v741_v31 = vmul.f32 %v733_v24, %v725_v19  ;;  %v743_v41 = vmul.f32 %v735_v30, %v727_v28  ;;  %v1397_v30 = vld [vmem:[#allocation3 + $0x2a0] sm:$0xff] }
 0x1c8   : > { %v726_v29 = vmax.f32 %v718_v26, 0.0  ;;  %1135 = vadd.xlane.f32.xlu1 %v1120_v22  ;;  %1473 = vadd.xlane.f32.xlu0 %v1464_v23  ;;  %v728_v36 = vmax.f32 %v720_v25, 0.0  ;;  %v806_v23 = vld [vmem:[%s2004_s30 + $0x58] sm:$0xff]  ;;  %v805_v25 = vld [vmem:[%s2004_s30 + $0x50] sm:$0xff] }
 0x1c9   : > { %v712_v32 = vpop.xlane.xlu1 %711  ;;  %v710_v33 = vpop.xlane.xlu0 %709 }
 0x1ca   : > { %v742_v37 = vmul.f32 %v734_v27, %v726_v29  ;;  %v722_v38 = vmul.f32 0.00390625, %v712_v32  ;;  %v721_v39 = vmul.f32 0.00390625, %v710_v33  ;;  %v744_v49 = vmul.f32 %v736_v40, %v728_v36  ;;  %v1466_v29 = vld [vmem:[#allocation3 + $0x2d8] sm:$0xff] }
 0x1cb   : > { %v808_v36 = vld [vmem:[%s2004_s30 + $0x68] sm:$0xff] }
 0x1cc   : > { %v749_v42 = vadd.f32 %v742_v37, %v741_v31  ;;  %v729_v43 = vmax.f32 %v721_v39, 0.0  ;;  %1271 = vadd.xlane.f32.xlu1 %v1258_v34  ;;  %1203 = vadd.xlane.f32.xlu0 %v1189_v35  ;;  %v730_v51 = vmax.f32 %v722_v38, 0.0  ;;  %v807_v35 = vld [vmem:[%s2004_s30 + $0x60] sm:$0xff] }
 0x1cd   : > { %v716_v45 = vpop.xlane.xlu1 %715  ;;  %v714_v46 = vpop.xlane.xlu0 %713 }
 0x1ce   : > { %v750_v50 = vadd.f32 %v749_v42, %v743_v41  ;;  %v724_v52 = vmul.f32 0.00390625, %v716_v45  ;;  %v723_v54 = vmul.f32 0.00390625, %v714_v46  ;;  %v745_v56 = vmul.f32 %v737_v44, %v729_v43  ;;  %v1329_v42 = vld [vmem:[#allocation3 + $0x270] sm:$0xff]  ;;  %v1260_v43 = vld [vmem:[#allocation3 + $0x238] sm:$0xff] }
 0x1cf   : > { %v746_v0 = vmul.f32 %v738_v53, %v730_v51 }
 0x1d0   : > { %v751_v55 = vadd.f32 %v750_v50, %v744_v49  ;;  %1407 = vadd.xlane.f32.xlu1 %v1396_v47  ;;  %1339 = vadd.xlane.f32.xlu0 %v1327_v48  ;;  %v732_v57 = vmax.f32 %v724_v52, 0.0  ;;  %v731_v59 = vmax.f32 %v723_v54, 0.0  ;;  %v810_v50 = vld [vmem:[%s2004_s30 + $0x78] sm:$0xff]  ;;  %v809_v52 = vld [vmem:[%s2004_s30 + $0x70] sm:$0xff] }
 0x1d1   : > { %v774_v60 = vpop.xlane.xlu1 %773  ;;  %v772_v61 = vpop.xlane.xlu0 %771 }
 0x1d2   : > { %v752_v1 = vadd.f32 %v751_v55, %v745_v56  ;;  %v788_v3 = vmul.f32 0.00390625, %v774_v60  ;;  %v787_v4 = vmul.f32 0.00390625, %v772_v61  ;;  %v747_v8 = vmul.f32 %v739_v58, %v731_v59  ;;  %v1398_v58 = vld [vmem:[#allocation3 + $0x2a8] sm:$0xff] }
 0x1d3   : > { %v748_v11 = vmul.f32 %v740_v2, %v732_v57  ;;  %v1467_v57 = vld [vmem:[#allocation3 + $0x2e0] sm:$0xff]  ;;  %v873_v2 = vld [vmem:[%s2004_s30 + $0x80] sm:$0xff] }
 0x1d4   : > { %v753_v7 = vadd.f32 %v752_v1, %v746_v0  ;;  %v796_v9 = vmax.f32 %v788_v3, 0.0  ;;  %v795_v10 = vmax.f32 %v787_v4, 0.0  ;;  %1205 = vadd.xlane.f32.xlu1 %v1190_v62  ;;  %1475 = vadd.xlane.f32.xlu0 %v1465_v63  ;;  %v874_v1 = vld [vmem:[%s2004_s30 + $0x88] sm:$0xff] }
 0x1d5   : > { %v778_v12 = vpop.xlane.xlu1 %777  ;;  %v776_v13 = vpop.xlane.xlu0 %775 }
 0x1d6   : > { %v754_v16 = vadd.f32 %v753_v7, %v747_v8  ;;  %v812_v17 = vmul.f32 %v804_v5, %v796_v9  ;;  %v811_v18 = vmul.f32 %v803_v6, %v795_v10  ;;  %v790_v19 = vmul.f32 0.00390625, %v778_v12  ;;  %v1399_v8 = vld [vmem:[#allocation3 + $0x2b0] sm:$0xff]  ;;  %v1330_v9 = vld [vmem:[#allocation3 + $0x278] sm:$0xff] }
 0x1d7   : > { %v789_v20 = vmul.f32 0.00390625, %v776_v13 }
 0x1d8   : > { %v755_v21 = vadd.f32 %v754_v16, %v748_v11  ;;  %v819_v22 = vadd.f32 %v812_v17, %v811_v18  ;;  %v798_v24 = vmax.f32 %v790_v19, 0.0  ;;  %1341 = vadd.xlane.f32.xlu1 %v1328_v14  ;;  %1273 = vadd.xlane.f32.xlu0 %v1259_v15  ;;  %v876_v16 = vld [vmem:[%s2004_s30 + $0x98] sm:$0xff]  ;;  %v875_v17 = vld [vmem:[%s2004_s30 + $0x90] sm:$0xff] }
 0x1d9   : > { %v797_v26 = vmax.f32 %v789_v20, 0.0  ;;  %v782_v27 = vpop.xlane.xlu1 %781  ;;  %v780_v28 = vpop.xlane.xlu0 %779 }
 0x1da   : > { %v792_v31 = vmul.f32 0.00390625, %v782_v27  ;;  %v791_v32 = vmul.f32 0.00390625, %v780_v28  ;;  %v814_v33 = vmul.f32 %v806_v23, %v798_v24  ;;  %v756_v46 = vrot.slane %v755_v21, 4  ;;  %v1400_v24 = vld [vmem:[#allocation3 + $0x2b8] sm:$0xff] }
 0x1db   : > { %v813_v34 = vmul.f32 %v805_v25, %v797_v26  ;;  %v1468_v25 = vld [vmem:[#allocation3 + $0x2e8] sm:$0xff] }
 0x1dc   : > { %v800_v37 = vmax.f32 %v792_v31, 0.0  ;;  %v799_v38 = vmax.f32 %v791_v32, 0.0  ;;  %1477 = vadd.xlane.f32.xlu1 %v1466_v29  ;;  %1409 = vadd.xlane.f32.xlu0 %v1397_v30  ;;  %v757_v61 = vadd.f32 %v756_v46, %v755_v21  ;;  %v878_v32 = vld [vmem:[%s2004_s30 + $0xa8] sm:$0xff] }
 0x1dd   : > { %v820_v39 = vadd.f32 %v819_v22, %v813_v34  ;;  %v786_v40 = vpop.xlane.xlu1 %785  ;;  %v784_v41 = vpop.xlane.xlu0 %783 }
 0x1de   : > { %v815_v44 = vmul.f32 %v807_v35, %v799_v38  ;;  %v794_v45 = vmul.f32 0.00390625, %v786_v40  ;;  %v816_v47 = vmul.f32 %v808_v36, %v800_v37  ;;  %v793_v49 = vmul.f32 0.00390625, %v784_v41  ;;  %v1469_v40 = vld [vmem:[#allocation3 + $0x2f0] sm:$0xff]  ;;  %v1470_v41 = vld [vmem:[#allocation3 + $0x2f8] sm:$0xff] }
 0x1df   : > { %v821_v48 = vadd.f32 %v820_v39, %v814_v33  ;;  %v758_v14 = vrot.slane %v757_v61, 2  ;;  %v877_v33 = vld [vmem:[%s2004_s30 + $0xa0] sm:$0xff] }
 0x1e0   : > { %v802_v51 = vmax.f32 %v794_v45, 0.0  ;;  %1343 = vadd.xlane.f32.xlu1 %v1329_v42  ;;  %1275 = vadd.xlane.f32.xlu0 %v1260_v43  ;;  %v801_v54 = vmax.f32 %v793_v49, 0.0 }
 0x1e1   : > { %v822_v53 = vadd.f32 %v821_v48, %v815_v44  ;;  %v844_v55 = vpop.xlane.xlu1 %843  ;;  %v842_v56 = vpop.xlane.xlu0 %841  ;;  %v759_v30 = vadd.f32 %v758_v14, %v757_v61  ;;  %v945_v14 = vld [vmem:[%s2004_s30 + $0xd0] sm:$0xff] }
 0x1e2   : > { %v858_v59 = vmul.f32 0.00390625, %v844_v55  ;;  %v857_v60 = vmul.f32 0.00390625, %v842_v56  ;;  %v818_v62 = vmul.f32 %v810_v50, %v802_v51  ;;  %v817_v0 = vmul.f32 %v809_v52, %v801_v54  ;;  %v880_v50 = vld [vmem:[%s2004_s30 + $0xb8] sm:$0xff]  ;;  %v879_v52 = vld [vmem:[%s2004_s30 + $0xb0] sm:$0xff] }
 0x1e3   : > { %v823_v63 = vadd.f32 %v822_v53, %v816_v47  ;;  %v760_v46 = vrot.slane %v759_v30, 1 }
 0x1e4   : > { %v866_v3 = vmax.f32 %v858_v59, 0.0  ;;  %v865_v4 = vmax.f32 %v857_v60, 0.0  ;;  %1479 = vadd.xlane.f32.xlu1 %v1467_v57  ;;  %1411 = vadd.xlane.f32.xlu0 %v1398_v58 }
 0x1e5   : > { %v824_v5 = vadd.f32 %v823_v63, %v817_v0  ;;  %v848_v6 = vpop.xlane.xlu1 %847  ;;  %v846_v7 = vpop.xlane.xlu0 %845  ;;  %v761_v60 = vadd.f32 %v760_v46, %v759_v30  ;;  %v944_v0 = vld [vmem:[%s2004_s30 + $0xc8] sm:$0xff] }
 0x1e6   : > { %v882_v10 = vmul.f32 %v874_v1, %v866_v3  ;;  %v881_v11 = vmul.f32 %v873_v2, %v865_v4  ;;  %v860_v12 = vmul.f32 0.00390625, %v848_v6  ;;  %v859_v13 = vmul.f32 0.00390625, %v846_v7  ;;  %v943_v1 = vld [vmem:[%s2004_s30 + $0xc0] sm:$0xff] }
 0x1e7   : > { %v825_v15 = vadd.f32 %v824_v5, %v818_v62 }
 0x1e8   : > { %v889_v18 = vadd.f32 %v882_v10, %v881_v11  ;;  %v868_v19 = vmax.f32 %v860_v12, 0.0  ;;  %v867_v20 = vmax.f32 %v859_v13, 0.0  ;;  %1413 = vadd.xlane.f32.xlu1 %v1399_v8  ;;  %1345 = vadd.xlane.f32.xlu0 %v1330_v9  ;;  %v946_v13 = vld [vmem:[%s2004_s30 + $0xd8] sm:$0xff] }
 0x1e9   : > { %v826_v21 = vrot.slane %v825_v15, 4  ;;  %v852_v22 = vpop.xlane.xlu1 %851  ;;  %v850_v23 = vpop.xlane.xlu0 %849 }
 0x1ea   : > { %v884_v26 = vmul.f32 %v876_v16, %v868_v19  ;;  %v883_v27 = vmul.f32 %v875_v17, %v867_v20  ;;  %v862_v28 = vmul.f32 0.00390625, %v852_v22  ;;  %v861_v29 = vmul.f32 0.00390625, %v850_v23 }
 0x1eb   : > { %v827_v31 = vadd.f32 %v826_v21, %v825_v15 }
 0x1ec   : > { %v890_v34 = vadd.f32 %v889_v18, %v883_v27  ;;  %v870_v35 = vmax.f32 %v862_v28, 0.0  ;;  %v869_v36 = vmax.f32 %v861_v29, 0.0  ;;  %1415 = vadd.xlane.f32.xlu1 %v1400_v24  ;;  %1481 = vadd.xlane.f32.xlu0 %v1468_v25  ;;  %v947_v27 = vld [vmem:[%s2004_s30 + $0xe0] sm:$0xff] }
 0x1ed   : > { %v828_v37 = vrot.slane %v827_v31, 2  ;;  %v856_v38 = vpop.xlane.xlu1 %855  ;;  %v854_v39 = vpop.xlane.xlu0 %853 }
 0x1ee   : > { %v886_v42 = vmul.f32 %v878_v32, %v870_v35  ;;  %v891_v43 = vadd.f32 %v890_v34, %v884_v26  ;;  %v885_v44 = vmul.f32 %v877_v33, %v869_v36  ;;  %v864_v45 = vmul.f32 0.00390625, %v856_v38  ;;  %v948_v26 = vld [vmem:[%s2004_s30 + $0xe8] sm:$0xff] }
 0x1ef   : > { %v829_v47 = vadd.f32 %v828_v37, %v827_v31  ;;  %v863_v48 = vmul.f32 0.00390625, %v854_v39 }
 0x1f0   : > { %v892_v49 = vadd.f32 %v891_v43, %v885_v44  ;;  %v872_v51 = vmax.f32 %v864_v45, 0.0  ;;  %1483 = vadd.xlane.f32.xlu0 %v1469_v40  ;;  %1485 = vadd.xlane.f32.xlu1 %v1470_v41  ;;  %v950_v41 = vld [vmem:[%s2004_s30 + $0xf8] sm:$0xff]  ;;  %v949_v43 = vld [vmem:[%s2004_s30 + $0xf0] sm:$0xff] }
 0x1f1   : > { %v830_v53 = vrot.slane %v829_v47, 1  ;;  %v871_v54 = vmax.f32 %v863_v48, 0.0  ;;  %v914_v55 = vpop.xlane.xlu1 %913  ;;  %v912_v56 = vpop.xlane.xlu0 %911 }
 0x1f2   : > { %v893_v57 = vadd.f32 %v892_v49, %v886_v42  ;;  %v928_v58 = vmul.f32 0.00390625, %v914_v55  ;;  %v927_v59 = vmul.f32 0.00390625, %v912_v56  ;;  %v888_v62 = vmul.f32 %v880_v50, %v872_v51  ;;  %v1013_v55 = vld [vmem:[%s2004_s30 + $0x100] sm:$0xff] }
 0x1f3   : > { %v831_v61 = vadd.f32 %v830_v53, %v829_v47  ;;  %v887_v63 = vmul.f32 %v879_v52, %v871_v54  ;;  %v1014_v54 = vld [vmem:[%s2004_s30 + $0x108] sm:$0xff] }
 0x1f4   : > { %v936_v2 = vmax.f32 %v928_v58, 0.0  ;;  %v935_v3 = vmax.f32 %v927_v59, 0.0 }
 0x1f5   : > { %v832_v4 = vadd.f32 %v831_v61, %v761_v60  ;;  %v894_v5 = vadd.f32 %v893_v57, %v887_v63  ;;  %v918_v6 = vpop.xlane.xlu1 %917  ;;  %v916_v7 = vpop.xlane.xlu0 %915 }
 0x1f6   : > { %v952_v8 = vmul.f32 %v944_v0, %v936_v2  ;;  %v951_v9 = vmul.f32 %v943_v1, %v935_v3  ;;  %v930_v10 = vmul.f32 0.00390625, %v918_v6  ;;  %v929_v11 = vmul.f32 0.00390625, %v916_v7  ;;  %v1016_v3 = vld [vmem:[%s2004_s30 + $0x118] sm:$0xff] }
 0x1f7   : > { %v895_v12 = vadd.f32 %v894_v5, %v888_v62  ;;  %v1015_v5 = vld [vmem:[%s2004_s30 + $0x110] sm:$0xff] }
 0x1f8   : > { %v959_v15 = vadd.f32 %v952_v8, %v951_v9  ;;  %v938_v16 = vmax.f32 %v930_v10, 0.0  ;;  %v937_v17 = vmax.f32 %v929_v11, 0.0 }
 0x1f9   : > { %v896_v18 = vrot.slane %v895_v12, 4  ;;  %v922_v19 = vpop.xlane.xlu1 %921  ;;  %v920_v20 = vpop.xlane.xlu0 %919 }
 0x1fa   : > { %v954_v21 = vmul.f32 %v946_v13, %v938_v16  ;;  %v953_v22 = vmul.f32 %v945_v14, %v937_v17  ;;  %v932_v23 = vmul.f32 0.00390625, %v922_v19  ;;  %v931_v24 = vmul.f32 0.00390625, %v920_v20  ;;  %v1017_v16 = vld [vmem:[%s2004_s30 + $0x120] sm:$0xff] }
 0x1fb   : > { %v897_v25 = vadd.f32 %v896_v18, %v895_v12 }
 0x1fc   : > { %v960_v28 = vadd.f32 %v959_v15, %v953_v22  ;;  %v940_v29 = vmax.f32 %v932_v23, 0.0  ;;  %v939_v30 = vmax.f32 %v931_v24, 0.0 }
 0x1fd   : > { %v898_v31 = vrot.slane %v897_v25, 2  ;;  %v926_v32 = vpop.xlane.xlu1 %925  ;;  %v924_v33 = vpop.xlane.xlu0 %923 }
 0x1fe   : > { %v956_v34 = vmul.f32 %v948_v26, %v940_v29  ;;  %v961_v35 = vadd.f32 %v960_v28, %v954_v21  ;;  %v955_v36 = vmul.f32 %v947_v27, %v939_v30  ;;  %v934_v37 = vmul.f32 0.00390625, %v926_v32  ;;  %v1083_v28 = vld [vmem:[%s2004_s30 + $0x140] sm:$0xff]  ;;  %v1085_v30 = vld [vmem:[%s2004_s30 + $0x150] sm:$0xff]  ;;  %v1084_v32 = vld [vmem:[%s2004_s30 + $0x148] sm:$0xff] }
 0x1ff   : > { %v899_v38 = vadd.f32 %v898_v31, %v897_v25  ;;  %v933_v39 = vmul.f32 0.00390625, %v924_v33 }
 0x200   : > { %v962_v40 = vadd.f32 %v961_v35, %v955_v36  ;;  %v942_v42 = vmax.f32 %v934_v37, 0.0 }
 0x201   : > { %v900_v44 = vrot.slane %v899_v38, 1  ;;  %v941_v45 = vmax.f32 %v933_v39, 0.0  ;;  %v984_v46 = vpop.xlane.xlu1 %983  ;;  %v982_v47 = vpop.xlane.xlu0 %981 }
 0x202   : > { %v963_v48 = vadd.f32 %v962_v40, %v956_v34  ;;  %v998_v49 = vmul.f32 0.00390625, %v984_v46  ;;  %v997_v50 = vmul.f32 0.00390625, %v982_v47  ;;  %v958_v52 = vmul.f32 %v950_v41, %v942_v42 }
 0x203   : > { %v901_v51 = vadd.f32 %v900_v44, %v899_v38  ;;  %v957_v53 = vmul.f32 %v949_v43, %v941_v45  ;;  %v1154_v43 = vld [vmem:[%s2004_s30 + $0x188] sm:$0xff]  ;;  %v1153_v44 = vld [vmem:[%s2004_s30 + $0x180] sm:$0xff] }
 0x204   : > { %v1006_v56 = vmax.f32 %v998_v49, 0.0  ;;  %v1005_v57 = vmax.f32 %v997_v50, 0.0 }
 0x205   : > { %v902_v58 = vadd.f32 %v901_v51, %v832_v4  ;;  %v964_v59 = vadd.f32 %v963_v48, %v957_v53  ;;  %v988_v60 = vpop.xlane.xlu1 %987  ;;  %v986_v61 = vpop.xlane.xlu0 %985 }
 0x206   : > { %v1022_v62 = vmul.f32 %v1014_v54, %v1006_v56  ;;  %v1021_v63 = vmul.f32 %v1013_v55, %v1005_v57  ;;  %v1000_v0 = vmul.f32 0.00390625, %v988_v60  ;;  %v999_v1 = vmul.f32 0.00390625, %v986_v61  ;;  %v1155_v55 = vld [vmem:[%s2004_s30 + $0x190] sm:$0xff]  ;;  %v1086_v56 = vld [vmem:[%s2004_s30 + $0x158] sm:$0xff] }
 0x207   : > { %v965_v2 = vadd.f32 %v964_v59, %v958_v52 }
 0x208   : > { %v1029_v6 = vadd.f32 %v1022_v62, %v1021_v63  ;;  %v1008_v7 = vmax.f32 %v1000_v0, 0.0  ;;  %v1007_v8 = vmax.f32 %v999_v1, 0.0 }
 0x209   : > { %v966_v9 = vrot.slane %v965_v2, 4  ;;  %v1052_v10 = vpop.xlane.xlu1 %1051  ;;  %v990_v11 = vpop.xlane.xlu0 %989 }
 0x20a   : > { %v1024_v12 = vmul.f32 %v1016_v3, %v1008_v7  ;;  %v1023_v13 = vmul.f32 %v1015_v5, %v1007_v8  ;;  %v1001_v4 = vmul.f32 0.00390625, %v990_v11  ;;  %v1067_v15 = vmul.f32 0.00390625, %v1052_v10  ;;  %v1224_v3 = vld [vmem:[%s2004_s30 + $0x1c8] sm:$0xff]  ;;  %v1223_v5 = vld [vmem:[%s2004_s30 + $0x1c0] sm:$0xff] }
 0x20b   : > { %v967_v14 = vadd.f32 %v966_v9, %v965_v2 }
 0x20c   : > { %v1030_v17 = vadd.f32 %v1029_v6, %v1023_v13  ;;  %v1009_v18 = vmax.f32 %v1001_v4, 0.0  ;;  %v1075_v26 = vmax.f32 %v1067_v15, 0.0  ;;  %v1087_v15 = vld [vmem:[%s2004_s30 + $0x160] sm:$0xff] }
 0x20d   : > { %v968_v19 = vrot.slane %v967_v14, 2  ;;  %v1056_v20 = vpop.xlane.xlu1 %1055  ;;  %v1054_v21 = vpop.xlane.xlu0 %1053 }
 0x20e   : > { %v1031_v22 = vadd.f32 %v1030_v17, %v1024_v12  ;;  %v1025_v23 = vmul.f32 %v1017_v16, %v1009_v18  ;;  %v1069_v24 = vmul.f32 0.00390625, %v1056_v20  ;;  %v1068_v27 = vmul.f32 0.00390625, %v1054_v21  ;;  %v1018_v16 = vld [vmem:[%s2004_s30 + $0x128] sm:$0xff] }
 0x20f   : > { %v969_v25 = vadd.f32 %v968_v19, %v967_v14  ;;  %v1091_v40 = vmul.f32 %v1083_v28, %v1075_v26  ;;  %v1225_v26 = vld [vmem:[%s2004_s30 + $0x1d0] sm:$0xff] }
 0x210   : > { %v2098_v29 = vadd.f32 %v1031_v22, %v1025_v23  ;;  %v1077_v31 = vmax.f32 %v1069_v24, 0.0  ;;  %v1076_v34 = vmax.f32 %v1068_v27, 0.0  ;;  %v1156_v27 = vld [vmem:[%s2004_s30 + $0x198] sm:$0xff] }
 0x211   : > { %v970_v33 = vrot.slane %v969_v25, 1  ;;  %v1124_v35 = vpop.xlane.xlu1 %1123  ;;  %v1122_v36 = vpop.xlane.xlu0 %1121 }
 0x212   : > { %v1138_v37 = vmul.f32 0.00390625, %v1124_v35  ;;  %v1137_v38 = vmul.f32 0.00390625, %v1122_v36  ;;  %v1093_v41 = vmul.f32 %v1085_v30, %v1077_v31  ;;  %v1092_v42 = vmul.f32 %v1084_v32, %v1076_v34 }
 0x213   : > { %v971_v39 = vadd.f32 %v970_v33, %v969_v25 }
 0x214   : > { %v1146_v45 = vmax.f32 %v1138_v37, 0.0  ;;  %v1145_v46 = vmax.f32 %v1137_v38, 0.0  ;;  %v1099_v47 = vadd.f32 %v1092_v42, %v1091_v40  ;;  %v1293_v40 = vld [vmem:[%s2004_s30 + $0x200] sm:$0xff] }
 0x215   : > { %v1126_v48 = vpop.xlane.xlu1 %1125  ;;  %v1058_v49 = vpop.xlane.xlu0 %1057  ;;  %v2104_v50 = vadd.f32 %v971_v39, %v902_v58  ;;  %v1294_v39 = vld [vmem:[%s2004_s30 + $0x208] sm:$0xff] }
 0x216   : > { %v1162_v51 = vmul.f32 %v1154_v43, %v1146_v45  ;;  %v1161_v52 = vmul.f32 %v1153_v44, %v1145_v46  ;;  %v1139_v53 = vmul.f32 0.00390625, %v1126_v48  ;;  %v1070_v54 = vmul.f32 0.00390625, %v1058_v49 }
 0x217   : > { %v1100_v57 = vadd.f32 %v1099_v47, %v1093_v41 }
 0x218   : > { %v1169_v59 = vadd.f32 %v1162_v51, %v1161_v52  ;;  %v1147_v60 = vmax.f32 %v1139_v53, 0.0  ;;  %v1078_v61 = vmax.f32 %v1070_v54, 0.0  ;;  %v1088_v51 = vld [vmem:[%s2004_s30 + $0x168] sm:$0xff]  ;;  %v1019_v52 = vld [vmem:[%s2004_s30 + $0x130] sm:$0xff] }
 0x219   : > { %v1194_v62 = vpop.xlane.xlu1 %1193  ;;  %v1192_v63 = vpop.xlane.xlu0 %1191 }
 0x21a   : > { %v1163_v0 = vmul.f32 %v1155_v55, %v1147_v60  ;;  %v1094_v1 = vmul.f32 %v1086_v56, %v1078_v61  ;;  %v1208_v58 = vmul.f32 0.00390625, %v1194_v62  ;;  %v1207_v2 = vmul.f32 0.00390625, %v1192_v63  ;;  %v1226_v63 = vld [vmem:[%s2004_s30 + $0x1d8] sm:$0xff] }
 0x21c   : > { %v1170_v6 = vadd.f32 %v1169_v59, %v1163_v0  ;;  %v1101_v7 = vadd.f32 %v1100_v57, %v1094_v1  ;;  %v1216_v8 = vmax.f32 %v1208_v58, 0.0  ;;  %v1215_v9 = vmax.f32 %v1207_v2, 0.0  ;;  %v1157_v0 = vld [vmem:[%s2004_s30 + $0x1a0] sm:$0xff] }
 0x21d   : > { %v1060_v10 = vpop.xlane.xlu1 %1059  ;;  %v992_v11 = vpop.xlane.xlu0 %991 }
 0x21e   : > { %v1232_v12 = vmul.f32 %v1224_v3, %v1216_v8  ;;  %v1231_v13 = vmul.f32 %v1223_v5, %v1215_v9  ;;  %v1071_v4 = vmul.f32 0.00390625, %v1060_v10  ;;  %v1002_v14 = vmul.f32 0.00390625, %v992_v11 }
 0x220   : > { %v1239_v17 = vadd.f32 %v1232_v12, %v1231_v13  ;;  %v1079_v18 = vmax.f32 %v1071_v4, 0.0  ;;  %v1010_v19 = vmax.f32 %v1002_v14, 0.0  ;;  %v1020_v4 = vld [vmem:[%s2004_s30 + $0x138] sm:$0xff] }
 0x221   : > { %v1196_v20 = vpop.xlane.xlu1 %1195  ;;  %v1128_v21 = vpop.xlane.xlu0 %1127 }
 0x222   : > { %v1095_v22 = vmul.f32 %v1087_v15, %v1079_v18  ;;  %v1026_v23 = vmul.f32 %v1018_v16, %v1010_v19  ;;  %v1209_v24 = vmul.f32 0.00390625, %v1196_v20  ;;  %v1140_v25 = vmul.f32 0.00390625, %v1128_v21 }
 0x224   : > { %v1102_v28 = vadd.f32 %v1101_v7, %v1095_v22  ;;  %v1033_v30 = vadd.f32 %v2098_v29, %v1026_v23  ;;  %v1217_v31 = vmax.f32 %v1209_v24, 0.0  ;;  %v1148_v32 = vmax.f32 %v1140_v25, 0.0 }
 0x225   : > { %v1264_v33 = vpop.xlane.xlu1 %1263  ;;  %v1262_v34 = vpop.xlane.xlu0 %1261 }
 0x226   : > { %v1233_v35 = vmul.f32 %v1225_v26, %v1217_v31  ;;  %v1164_v36 = vmul.f32 %v1156_v27, %v1148_v32  ;;  %v1278_v37 = vmul.f32 0.00390625, %v1264_v33  ;;  %v1277_v38 = vmul.f32 0.00390625, %v1262_v34 }
 0x228   : > { %v1240_v41 = vadd.f32 %v1239_v17, %v1233_v35  ;;  %v1171_v42 = vadd.f32 %v1170_v6, %v1164_v36  ;;  %v1286_v43 = vmax.f32 %v1278_v37, 0.0  ;;  %v1285_v44 = vmax.f32 %v1277_v38, 0.0  ;;  %v1090_v36 = vld [vmem:[%s2004_s30 + $0x178] sm:$0xff] }
 0x229   : > { %v1062_v45 = vpop.xlane.xlu1 %1061  ;;  %v994_v46 = vpop.xlane.xlu0 %993 }
 0x22a   : > { %v1302_v29 = vmul.f32 %v1294_v39, %v1286_v43  ;;  %v1301_v47 = vmul.f32 %v1293_v40, %v1285_v44  ;;  %v1072_v48 = vmul.f32 0.00390625, %v1062_v45  ;;  %v1003_v49 = vmul.f32 0.00390625, %v994_v46 }
 0x22c   : > { %v2119_v53 = vadd.f32 %v1302_v29, %v1301_v47  ;;  %v1080_v54 = vmax.f32 %v1072_v48, 0.0  ;;  %v1011_v55 = vmax.f32 %v1003_v49, 0.0 }
 0x22d   : > { %v1198_v56 = vpop.xlane.xlu1 %1197  ;;  %v1130_v57 = vpop.xlane.xlu0 %1129 }
 0x22e   : > { %v1096_v59 = vmul.f32 %v1088_v51, %v1080_v54  ;;  %v1027_v60 = vmul.f32 %v1019_v52, %v1011_v55  ;;  %v1210_v61 = vmul.f32 0.00390625, %v1198_v56  ;;  %v1141_v62 = vmul.f32 0.00390625, %v1130_v57  ;;  %v1158_v52 = vld [vmem:[%s2004_s30 + $0x1a8] sm:$0xff] }
 0x230   : > { %v1103_v1 = vadd.f32 %v1102_v28, %v1096_v59  ;;  %v1034_v58 = vadd.f32 %v1033_v30, %v1027_v60  ;;  %v1218_v2 = vmax.f32 %v1210_v61, 0.0  ;;  %v1149_v3 = vmax.f32 %v1141_v62, 0.0  ;;  %v1089_v28 = vld [vmem:[%s2004_s30 + $0x170] sm:$0xff] }
 0x231   : > { %v1332_v5 = vpop.xlane.xlu1 %1331  ;;  %v1266_v6 = vpop.xlane.xlu0 %1265 }
 0x232   : > { %v1234_v7 = vmul.f32 %v1226_v63, %v1218_v2  ;;  %v1165_v8 = vmul.f32 %v1157_v0, %v1149_v3  ;;  %v1347_v2 = vmul.f32 0.00390625, %v1332_v5  ;;  %v1279_v3 = vmul.f32 0.00390625, %v1266_v6 }
 0x234   : > { %v2123_v9 = vadd.f32 %v1240_v41, %v1234_v7  ;;  %v1172_v10 = vadd.f32 %v1171_v42, %v1165_v8  ;;  %v1160_v8 = vld [vmem:[%s2004_s30 + $0x1b8] sm:$0xff]  ;;  %v1287_v6 = vmax.f32 %v1279_v3, 0.0 }
 0x235   : > { %v996_v11 = vpop.xlane.xlu1 %995  ;;  %v1334_v12 = vpop.xlane.xlu0 %1333 }
 0x236   : > { %v1004_v13 = vmul.f32 0.00390625, %v996_v11  ;;  %v1348_v7 = vmul.f32 0.00390625, %v1334_v12  ;;  %v1227_v12 = vld [vmem:[%s2004_s30 + $0x1e0] sm:$0xff] }
 0x238   : > { %v1012_v14 = vmax.f32 %v1004_v13, 0.0 }
 0x239   : > { %v1132_v15 = vpop.xlane.xlu1 %1131  ;;  %v1064_v16 = vpop.xlane.xlu0 %1063 }
 0x23a   : > { %v1028_v17 = vmul.f32 %v1020_v4, %v1012_v14  ;;  %v1073_v22 = vmul.f32 0.00390625, %v1064_v16  ;;  %v1142_v44 = vmul.f32 0.00390625, %v1132_v15 }
 0x23c   : > { %v1035_v18 = vadd.f32 %v1034_v58, %v1028_v17  ;;  %v1081_v27 = vmax.f32 %v1073_v22, 0.0  ;;  %v1150_v49 = vmax.f32 %v1142_v44, 0.0  ;;  %v1356_v22 = vmax.f32 %v1348_v7, 0.0  ;;  %v1229_v44 = vld [vmem:[%s2004_s30 + $0x1f0] sm:$0xff] }
 0x23d   : > { %v2126_v19 = vpop.xlane.xlu1 %1267  ;;  %v1200_v20 = vpop.xlane.xlu0 %1199 }
 0x23e   : > { %v1036_v21 = vrot.slane %v1035_v18, 4  ;;  %v1097_v34 = vmul.f32 %v1089_v28, %v1081_v27  ;;  %v1166_v59 = vmul.f32 %v1158_v52, %v1150_v49  ;;  %v1211_v61 = vmul.f32 0.00390625, %v1200_v20 }
 0x240   : > { %v1037_v23 = vadd.f32 %v1036_v21, %v1035_v18  ;;  %v1104_v42 = vadd.f32 %v1103_v1, %v1097_v34  ;;  %v1173_v11 = vadd.f32 %v1172_v10, %v1166_v59  ;;  %v1219_v15 = vmax.f32 %v1211_v61, 0.0  ;;  %v1364_v10 = vld [vmem:[%s2004_s30 + $0x248] sm:$0xff] }
 0x241   : > { %v2128_v24 = vpop.xlane.xlu1 %1401  ;;  %v2130_v25 = vpop.xlane.xlu0 %1335  ;;  %v1228_v34 = vld [vmem:[%s2004_s30 + $0x1e8] sm:$0xff] }
 0x242   : > { %v1038_v26 = vrot.slane %v1037_v23, 2 }
 0x244   : > { %v1039_v30 = vadd.f32 %v1038_v26, %v1037_v23  ;;  %v1355_v23 = vmax.f32 %v1347_v2, 0.0  ;;  %v1295_v26 = vld [vmem:[%s2004_s30 + $0x210] sm:$0xff]  ;;  %v1366_v2 = vld [vmem:[%s2004_s30 + $0x258] sm:$0xff] }
 0x245   : > { %v1066_v31 = vpop.xlane.xlu1 %1065  ;;  %v2133_v32 = vpop.xlane.xlu0 %1403 }
 0x246   : > { %v1040_v33 = vrot.slane %v1039_v30, 1  ;;  %v1074_v35 = vmul.f32 0.00390625, %v1066_v31  ;;  %v1280_v31 = vmul.f32 0.00390625, %v2126_v19 }
 0x248   : > { %v1041_v37 = vadd.f32 %v1040_v33, %v1039_v30  ;;  %v1082_v38 = vmax.f32 %v1074_v35, 0.0  ;;  %v1363_v30 = vld [vmem:[%s2004_s30 + $0x240] sm:$0xff]  ;;  %v1349_v33 = vmul.f32 0.00390625, %v2130_v25  ;;  %v1417_v25 = vmul.f32 0.00390625, %v2128_v24 }
 0x249   : > { %v1202_v39 = vpop.xlane.xlu1 %1201  ;;  %v1134_v40 = vpop.xlane.xlu0 %1133 }
 0x24a   : > { %v1042_v41 = vadd.f32 %v1041_v37, %v2104_v50  ;;  %v1098_v43 = vmul.f32 %v1090_v36, %v1082_v38  ;;  %v1143_v48 = vmul.f32 0.00390625, %v1134_v40  ;;  %v1159_v50 = vld [vmem:[%s2004_s30 + $0x1b0] sm:$0xff]  ;;  %v1212_v4 = vmul.f32 0.00390625, %v1202_v39 }
 0x24b   : > { %v1235_v37 = vmul.f32 %v1227_v12, %v1219_v15  ;;  %v1303_v40 = vmul.f32 %v1295_v26, %v1287_v6  ;;  %v1357_v49 = vmax.f32 %v1349_v33, 0.0 }
 0x24c   : > { %v1105_v45 = vadd.f32 %v1104_v42, %v1098_v43  ;;  %v1151_v57 = vmax.f32 %v1143_v48, 0.0  ;;  %v1220_v27 = vmax.f32 %v1212_v4, 0.0  ;;  %v1418_v42 = vmul.f32 0.00390625, %v2133_v32  ;;  %v1365_v32 = vld [vmem:[%s2004_s30 + $0x250] sm:$0xff] }
 0x24d   : > { %v1338_v46 = vpop.xlane.xlu1 %1337  ;;  %v1270_v29 = vpop.xlane.xlu0 %1269  ;;  %v1288_v48 = vmax.f32 %v1280_v31, 0.0 }
 0x24e   : > { %v1106_v47 = vrot.slane %v1105_v45, 4  ;;  %v1167_v1 = vmul.f32 %v1159_v50, %v1151_v57  ;;  %v1350_v43 = vmul.f32 0.00390625, %v1338_v46  ;;  %v1242_v57 = vadd.f32 %v2123_v9, %v1235_v37 }
 0x24f   : > { %v1425_v9 = vmax.f32 %v1417_v25, 0.0 }
 0x250   : > { %v1107_v51 = vadd.f32 %v1106_v47, %v1105_v45  ;;  %v1174_v20 = vadd.f32 %v1173_v11, %v1167_v1  ;;  %v1371_v45 = vmul.f32 %v1363_v30, %v1355_v23  ;;  %v1236_v47 = vmul.f32 %v1228_v34, %v1220_v27  ;;  %v1230_v1 = vld [vmem:[%s2004_s30 + $0x1f8] sm:$0xff]  ;;  %v1298_v34 = vld [vmem:[%s2004_s30 + $0x228] sm:$0xff] }
 0x251   : > { %v2138_v54 = vpop.xlane.xlu1 %1471  ;;  %v2140_v55 = vpop.xlane.xlu0 %1405  ;;  %v1358_v24 = vmax.f32 %v1350_v43, 0.0  ;;  %v1373_v11 = vmul.f32 %v1365_v32, %v1357_v49 }
 0x252   : > { %v1108_v56 = vrot.slane %v1107_v51, 2  ;;  %v1419_v4 = vmul.f32 0.00390625, %v2140_v55 }
 0x253   : > { %v1374_v12 = vmul.f32 %v1366_v2, %v1358_v24  ;;  %v1367_v24 = vld [vmem:[%s2004_s30 + $0x260] sm:$0xff]  ;;  %v1504_v2 = vld [vmem:[%s2004_s30 + $0x2c8] sm:$0xff] }
 0x254   : > { %v1109_v60 = vadd.f32 %v1108_v56, %v1107_v51  ;;  %v1281_v51 = vmul.f32 0.00390625, %v1270_v29  ;;  %v1434_v29 = vld [vmem:[%s2004_s30 + $0x288] sm:$0xff]  ;;  %v1427_v33 = vmax.f32 %v1419_v4, 0.0 }
 0x255   : > { %v1136_v62 = vpop.xlane.xlu1 %1135  ;;  %v2143_v63 = vpop.xlane.xlu0 %1473 }
 0x256   : > { %v1110_v0 = vrot.slane %v1109_v60, 1  ;;  %v1144_v58 = vmul.f32 0.00390625, %v1136_v62  ;;  %v1296_v62 = vld [vmem:[%s2004_s30 + $0x218] sm:$0xff] }
 0x257   : > { %v1304_v15 = vmul.f32 %v1296_v62, %v1288_v48  ;;  %v1503_v48 = vld [vmem:[%s2004_s30 + $0x2c0] sm:$0xff] }
 0x258   : > { %v1111_v13 = vadd.f32 %v1110_v0, %v1109_v60  ;;  %v1152_v14 = vmax.f32 %v1144_v58, 0.0  ;;  %v1310_v60 = vadd.f32 %v2119_v53, %v1303_v40  ;;  %v1426_v0 = vmax.f32 %v1418_v42, 0.0 }
 0x259   : > { %v1272_v16 = vpop.xlane.xlu1 %1271  ;;  %v1204_v17 = vpop.xlane.xlu0 %1203  ;;  %v1243_v58 = vadd.f32 %v1242_v57, %v1236_v47  ;;  %v1299_v47 = vld [vmem:[%s2004_s30 + $0x230] sm:$0xff]  ;;  %v1436_v57 = vld [vmem:[%s2004_s30 + $0x298] sm:$0xff] }
 0x25a   : > { %v2146_v18 = vadd.f32 %v1111_v13, %v1042_v41  ;;  %v1168_v21 = vmul.f32 %v1160_v8, %v1152_v14  ;;  %v1213_v5 = vmul.f32 0.00390625, %v1204_v17  ;;  %v1372_v41 = vmul.f32 %v1364_v10, %v1356_v22  ;;  %v1433_v17 = vld [vmem:[%s2004_s30 + $0x280] sm:$0xff] }
 0x25b   : > { %v1282_v7 = vmul.f32 0.00390625, %v1272_v16  ;;  %v1289_v13 = vmax.f32 %v1281_v51, 0.0  ;;  %v1442_v22 = vmul.f32 %v1434_v29, %v1426_v0  ;;  %v1487_v16 = vmul.f32 0.00390625, %v2138_v54 }
 0x25c   : > { %v1175_v28 = vadd.f32 %v1174_v20, %v1168_v21  ;;  %v1221_v39 = vmax.f32 %v1213_v5, 0.0  ;;  %v1379_v61 = vadd.f32 %v1372_v41, %v1371_v45  ;;  %v1297_v20 = vld [vmem:[%s2004_s30 + $0x220] sm:$0xff]  ;;  %v1441_v55 = vmul.f32 %v1433_v17, %v1425_v9 }
 0x25d   : > { %v1408_v35 = vpop.xlane.xlu1 %1407  ;;  %v2155_v36 = vpop.xlane.xlu0 %1339  ;;  %v1290_v10 = vmax.f32 %v1282_v7, 0.0  ;;  %v1305_v31 = vmul.f32 %v1297_v20, %v1289_v13  ;;  %v1488_v45 = vmul.f32 0.00390625, %v2143_v63  ;;  %v1368_v20 = vld [vmem:[%s2004_s30 + $0x268] sm:$0xff] }
 0x25e   : > { %v1176_v38 = vrot.slane %v1175_v28, 4  ;;  %v1237_v50 = vmul.f32 %v1229_v44, %v1221_v39  ;;  %v1420_v27 = vmul.f32 0.00390625, %v1408_v35  ;;  %v1380_v30 = vadd.f32 %v1379_v61, %v1373_v11  ;;  %v1435_v39 = vld [vmem:[%s2004_s30 + $0x290] sm:$0xff] }
 0x25f   : > { %v1351_v54 = vmul.f32 0.00390625, %v2155_v36  ;;  %v1311_v35 = vadd.f32 %v1310_v60, %v1304_v15  ;;  %v1449_v43 = vadd.f32 %v1442_v22, %v1441_v55  ;;  %v1495_v44 = vmax.f32 %v1487_v16, 0.0 }
 0x260   : > { %v1177_v19 = vadd.f32 %v1176_v38, %v1175_v28  ;;  %v1244_v5 = vadd.f32 %v1243_v58, %v1237_v50  ;;  %v1306_v25 = vmul.f32 %v1298_v34, %v1290_v10  ;;  %v1428_v49 = vmax.f32 %v1420_v27, 0.0  ;;  %v1300_v58 = vld [vmem:[%s2004_s30 + $0x238] sm:$0xff]  ;;  %v1505_v27 = vld [vmem:[%s2004_s30 + $0x2d0] sm:$0xff] }
 0x261   : > { %v1206_v52 = vpop.xlane.xlu1 %1205  ;;  %v2160_v56 = vpop.xlane.xlu0 %1475  ;;  %v1511_v62 = vmul.f32 %v1503_v48, %v1495_v44  ;;  %v1496_v0 = vmax.f32 %v1488_v45, 0.0 }
 0x262   : > { %v1178_v46 = vrot.slane %v1177_v19, 2  ;;  %v1214_v59 = vmul.f32 0.00390625, %v1206_v52  ;;  %v1312_v52 = vadd.f32 %v1311_v35, %v1305_v31  ;;  %v1444_v7 = vmul.f32 %v1436_v57, %v1428_v49  ;;  %v1438_v31 = vld [vmem:[%s2004_s30 + $0x2a8] sm:$0xff]  ;;  %v1506_v35 = vld [vmem:[%s2004_s30 + $0x2d8] sm:$0xff] }
 0x263   : > { %v1512_v22 = vmul.f32 %v1504_v2, %v1496_v0  ;;  %v1440_v2 = vld [vmem:[%s2004_s30 + $0x2b8] sm:$0xff] }
 0x264   : > { %v1179_v3 = vadd.f32 %v1178_v46, %v1177_v19  ;;  %v1222_v8 = vmax.f32 %v1214_v59, 0.0  ;;  %v1381_v19 = vadd.f32 %v1380_v30, %v1374_v12  ;;  %v1359_v59 = vmax.f32 %v1351_v54, 0.0 }
 0x265   : > { %v1342_v14 = vpop.xlane.xlu1 %1341  ;;  %v1274_v53 = vpop.xlane.xlu0 %1273 }
 0x266   : > { %v1180_v21 = vrot.slane %v1179_v3, 1  ;;  %v1238_v6 = vmul.f32 %v1230_v1, %v1222_v8  ;;  %v1283_v23 = vmul.f32 0.00390625, %v1274_v53  ;;  %v1352_v36 = vmul.f32 0.00390625, %v1342_v14 }
 0x267   : > { %v1489_v1 = vmul.f32 0.00390625, %v2160_v56  ;;  %v1375_v17 = vmul.f32 %v1367_v24, %v1359_v59 }
 0x268   : > { %v1181_v26 = vadd.f32 %v1180_v21, %v1179_v3  ;;  %v1245_v28 = vadd.f32 %v1244_v5, %v1238_v6  ;;  %v1291_v42 = vmax.f32 %v1283_v23, 0.0  ;;  %v1313_v3 = vadd.f32 %v1312_v52, %v1306_v25  ;;  %v1437_v5 = vld [vmem:[%s2004_s30 + $0x2a0] sm:$0xff]  ;;  %v1439_v25 = vld [vmem:[%s2004_s30 + $0x2b0] sm:$0xff] }
 0x269   : > { %v1478_v37 = vpop.xlane.xlu1 %1477  ;;  %v1410_v38 = vpop.xlane.xlu0 %1409  ;;  %v1360_v13 = vmax.f32 %v1352_v36, 0.0  ;;  %v1497_v12 = vmax.f32 %v1489_v1, 0.0  ;;  %v1370_v36 = vld [vmem:[%s2004_s30 + $0x278] sm:$0xff] }
 0x26a   : > { %v2176_v40 = vadd.f32 %v1181_v26, %v2146_v18  ;;  %v1246_v41 = vrot.slane %v1245_v28, 4  ;;  %v1443_v18 = vmul.f32 %v1435_v39, %v1427_v33  ;;  %v1421_v32 = vmul.f32 0.00390625, %v1410_v38 }
 0x26b   : > { %v1307_v61 = vmul.f32 %v1299_v47, %v1291_v42  ;;  %v1490_v4 = vmul.f32 0.00390625, %v1478_v37  ;;  %v1376_v33 = vmul.f32 %v1368_v20, %v1360_v13  ;;  %v1513_v45 = vmul.f32 %v1505_v27, %v1497_v12 }
 0x26c   : > { %v1247_v51 = vadd.f32 %v1246_v41, %v1245_v28  ;;  %v1450_v11 = vadd.f32 %v1449_v43, %v1443_v18  ;;  %v1429_v14 = vmax.f32 %v1421_v32, 0.0  ;;  %v1369_v28 = vld [vmem:[%s2004_s30 + $0x270] sm:$0xff]  ;;  %v1382_v41 = vadd.f32 %v1381_v19, %v1375_v17 }
 0x26d   : > { %v1344_v46 = vpop.xlane.xlu1 %1343  ;;  %v1276_v50 = vpop.xlane.xlu0 %1275  ;;  %v1314_v21 = vadd.f32 %v1313_v3, %v1307_v61  ;;  %v1498_v34 = vmax.f32 %v1490_v4, 0.0  ;;  %v1508_v3 = vld [vmem:[%s2004_s30 + $0x2e8] sm:$0xff] }
 0x26e   : > { %v1248_v60 = vrot.slane %v1247_v51, 2  ;;  %v1284_v63 = vmul.f32 0.00390625, %v1276_v50  ;;  %v1353_v29 = vmul.f32 0.00390625, %v1344_v46  ;;  %v1451_v26 = vadd.f32 %v1450_v11, %v1444_v7 }
 0x26f   : > { %v1445_v37 = vmul.f32 %v1437_v5, %v1429_v14  ;;  %v1383_v32 = vadd.f32 %v1382_v41, %v1376_v33  ;;  %v1514_v19 = vmul.f32 %v1506_v35, %v1498_v34 }
 0x270   : > { %v1249_v8 = vadd.f32 %v1248_v60, %v1247_v51  ;;  %v1292_v9 = vmax.f32 %v1284_v63, 0.0  ;;  %v1361_v16 = vmax.f32 %v1353_v29, 0.0  ;;  %v1519_v51 = vadd.f32 %v1512_v22, %v1511_v62 }
 0x271   : > { %v1480_v53 = vpop.xlane.xlu1 %1479  ;;  %v1412_v15 = vpop.xlane.xlu0 %1411  ;;  %v1452_v46 = vadd.f32 %v1451_v26, %v1445_v37 }
 0x272   : > { %v1250_v56 = vrot.slane %v1249_v8, 1  ;;  %v1308_v6 = vmul.f32 %v1300_v58, %v1292_v9  ;;  %v1422_v23 = vmul.f32 0.00390625, %v1412_v15  ;;  %v1491_v30 = vmul.f32 0.00390625, %v1480_v53 }
 0x273   : > { %v1377_v47 = vmul.f32 %v1369_v28, %v1361_v16  ;;  %v1520_v1 = vadd.f32 %v1519_v51, %v1513_v45 }
 0x274   : > { %v1251_v10 = vadd.f32 %v1250_v56, %v1249_v8  ;;  %v1315_v55 = vadd.f32 %v1314_v21, %v1308_v6  ;;  %v1430_v38 = vmax.f32 %v1422_v23, 0.0  ;;  %v1499_v18 = vmax.f32 %v1491_v30, 0.0  ;;  %v1509_v6 = vld [vmem:[%s2004_s30 + $0x2f0] sm:$0xff] }
 0x275   : > { %v1414_v39 = vpop.xlane.xlu1 %1413  ;;  %v1346_v54 = vpop.xlane.xlu0 %1345  ;;  %v1384_v29 = vadd.f32 %v1383_v32, %v1377_v47  ;;  %v1521_v13 = vadd.f32 %v1520_v1, %v1514_v19 }
 0x276   : > { %v1252_v42 = vadd.f32 %v1251_v10, %v2176_v40  ;;  %v1316_v43 = vrot.slane %v1315_v55, 4  ;;  %v1423_v44 = vmul.f32 0.00390625, %v1414_v39  ;;  %v1446_v48 = vmul.f32 %v1438_v31, %v1430_v38  ;;  %v1507_v40 = vld [vmem:[%s2004_s30 + $0x2e0] sm:$0xff]  ;;  %v1510_v10 = vld [vmem:[%s2004_s30 + $0x2f8] sm:$0xff] }
 0x277   : > { %v1354_v49 = vmul.f32 0.00390625, %v1346_v54  ;;  %v1515_v8 = vmul.f32 %v1507_v40, %v1499_v18 }
 0x278   : > { %v1317_v52 = vadd.f32 %v1316_v43, %v1315_v55  ;;  %v1431_v57 = vmax.f32 %v1423_v44, 0.0  ;;  %v1453_v62 = vadd.f32 %v1452_v46, %v1446_v48 }
 0x279   : > { %v1362_v50 = vmax.f32 %v1354_v49, 0.0  ;;  %v1416_v59 = vpop.xlane.xlu1 %1415  ;;  %v1482_v60 = vpop.xlane.xlu0 %1481  ;;  %v1522_v16 = vadd.f32 %v1521_v13, %v1515_v8 }
 0x27a   : > { %v1318_v61 = vrot.slane %v1317_v52, 2  ;;  %v1447_v63 = vmul.f32 %v1439_v25, %v1431_v57  ;;  %v1424_v0 = vmul.f32 0.00390625, %v1416_v59  ;;  %v1492_v24 = vmul.f32 0.00390625, %v1482_v60 }
 0x27b   : > { %v1378_v58 = vmul.f32 %v1370_v36, %v1362_v50 }
 0x27c   : > { %v1319_v7 = vadd.f32 %v1318_v61, %v1317_v52  ;;  %v1432_v9 = vmax.f32 %v1424_v0, 0.0  ;;  %v1500_v11 = vmax.f32 %v1492_v24, 0.0  ;;  %v1454_v4 = vadd.f32 %v1453_v62, %v1447_v63 }
 0x27d   : > { %v1385_v14 = vadd.f32 %v1384_v29, %v1378_v58  ;;  %v1484_v53 = vpop.xlane.xlu0 %1483  ;;  %v1486_v15 = vpop.xlane.xlu1 %1485 }
 0x27e   : > { %v1320_v17 = vrot.slane %v1319_v7, 1  ;;  %v1448_v56 = vmul.f32 %v1440_v2, %v1432_v9  ;;  %v1516_v20 = vmul.f32 %v1508_v3, %v1500_v11  ;;  %v1493_v21 = vmul.f32 0.00390625, %v1484_v53 }
 0x27f   : > { %v1386_v5 = vrot.slane %v1385_v14, 4  ;;  %v1494_v22 = vmul.f32 0.00390625, %v1486_v15 }
 0x280   : > { %v1321_v12 = vadd.f32 %v1320_v17, %v1319_v7  ;;  %v1455_v23 = vadd.f32 %v1454_v4, %v1448_v56  ;;  %v1501_v26 = vmax.f32 %v1493_v21, 0.0  ;;  %v1523_v31 = vadd.f32 %v1522_v16, %v1516_v20 }
 0x281   : > { %v1387_v27 = vadd.f32 %v1386_v5, %v1385_v14  ;;  %v1502_v28 = vmax.f32 %v1494_v22, 0.0 }
 0x282   : > { %v1322_v55 = vadd.f32 %v1321_v12, %v1252_v42  ;;  %v1456_v30 = vrot.slane %v1455_v23, 4  ;;  %v1517_v33 = vmul.f32 %v1509_v6, %v1501_v26 }
 0x283   : > { %v1388_v34 = vrot.slane %v1387_v27, 2  ;;  %v1518_v37 = vmul.f32 %v1510_v10, %v1502_v28 }
 0x284   : > { %v1457_v38 = vadd.f32 %v1456_v30, %v1455_v23  ;;  %v1524_v39 = vadd.f32 %v1523_v31, %v1517_v33 }
 0x285   : > { %v1389_v54 = vadd.f32 %v1388_v34, %v1387_v27 }
 0x286   : > { %v1458_v41 = vrot.slane %v1457_v38, 2  ;;  %v1525_v35 = vadd.f32 %v1524_v39, %v1518_v37 }
 0x287   : > { %v1390_v43 = vrot.slane %v1389_v54, 1 }
 0x288   : > { %v1459_v44 = vadd.f32 %v1458_v41, %v1457_v38  ;;  %v1526_v45 = vrot.slane %v1525_v35, 4 }
 0x289   : > { %v1391_v25 = vadd.f32 %v1390_v43, %v1389_v54 }
 0x28a   : > { %v1460_v47 = vrot.slane %v1459_v44, 1  ;;  %v1527_v48 = vadd.f32 %v1526_v45, %v1525_v35 }
 0x28b   : > { %v1392_v52 = vadd.f32 %v1391_v25, %v1322_v55 }
 0x28c   : > { %v1528_v49 = vrot.slane %v1527_v48, 2  ;;  %v1461_v51 = vadd.f32 %v1460_v47, %v1459_v44 }
 0x28e   : > { %v1529_v42 = vadd.f32 %v1528_v49, %v1527_v48  ;;  %v1462_v57 = vadd.f32 %v1461_v51, %v1392_v52 }
 0x290   : > { %v1530_v18 = vrot.slane %v1529_v42, 1 }
 0x292   : > { %v1531_v36 = vadd.f32 %v1530_v18, %v1529_v42 }
 0x294   : > { %v1532_v32 = vadd.f32 %v1531_v36, %v1462_v57 }
 0x296   : > { %1533 = vst [vmem:[%s2010_s9] sm:$0xff] %v1532_v32 }
 0x297 PF: > { %s13_s16 = sadd.s32 1, %s1824_s16   ;;  %s2221_s12 = smov %s1816_s14 }
 0x298   : > { %p10_p9 = scmp.ge.s32.totalorder %s13_s16, 6   ;;  %s2222_s13 = smov %s1820_s15 }
 0x299   : > { %s2223_s14 = smov %s2226_s17  ;;  %s2224_s15 = smov %s2230_s18 }
 0x29a   :  { %12 = sbr.rel (!%p10_p9) target bundleno = 3 (0x3), region = 96 }

</bundles_post_ra>
